<compile_context>
chip_gen: v6e
topology: v6e:2x2x1
jax: 0.10.0
libtpu: 0.0.40
codegen_flags: <defaults>
</compile_context>

<pallas_src>
import functools
import math

import jax
import jax.numpy as jnp
from jax.experimental import pallas as pl
from jax.experimental.pallas import tpu as pltpu


MAX_TILE_B = 256   # cap on batch rows per grid step (MXU-filling on v5e/v6e/v7x)


def _choose_tile(batch):
    """Pick (tile_rows, padded_batch).

    Big sublane-aligned tiles amortize per-step pipeline overhead and fill the
    MXU; when the batch allows, keep >= 2 grid steps so the 'parallel' axis can
    shard across v7x's two TensorCores.
    """
    b8 = max(8, pl.cdiv(batch, 8) * 8)                 # sublane alignment
    tile = min(MAX_TILE_B, b8)
    if b8 >= 16:                                       # allow >= 2 grid steps
        tile = min(tile, max(8, (b8 // 2) // 8 * 8))
    bp = pl.cdiv(b8, tile) * tile
    return tile, bp


def _sigmoid_approx(a):
    # sigmoid(a) = 1 / (1 + exp(-a)); approx reciprocal runs in the EUP slot.
    return pl.reciprocal(1.0 + jnp.exp(-a), approx=True)


def _apply_act(x, act):
    if act == "ReLU":
        return jnp.maximum(x, 0.0)
    if act == "Sigmoid":
        return _sigmoid_approx(x)
    if act == "Tanh":
        return jnp.tanh(x)
    raise ValueError(f"unsupported activation: {act}")


def _vanilla_vae_kernel(*refs, n_enc, n_dec, latent_dim, act):
    """Fused forward for one batch tile.

    Ref order: x, [w,b]*n_enc, w_head, b_head, [w,b]*n_dec, eps,
               x_hat (bf16), lat (f32, [mu | log_var | z]).
    """
    it = iter(refs)
    x_ref = next(it)
    enc = [(next(it), next(it)) for _ in range(n_enc)]
    w_head_ref, b_head_ref = next(it), next(it)
    dec = [(next(it), next(it)) for _ in range(n_dec)]
    eps_ref = next(it)
    xhat_ref, lat_ref = next(it), next(it)

    # ---- encoder: (Linear + act)* ------------------------------------------
    h = x_ref[...]                                        # bf16 (TILE_B, D0)
    for w_ref, b_ref in enc:
        a = jnp.dot(h, w_ref[...], preferred_element_type=jnp.float32)
        a = a + b_ref[...]
        h = _apply_act(a, act).astype(jnp.bfloat16)

    # ---- fused head: [mu | log_var] = h @ [W_mu | W_sigma] + [b_mu | b_sig] --
    head = jnp.dot(h, w_head_ref[...], preferred_element_type=jnp.float32)
    head = head + b_head_ref[...]
    mu = head[:, :latent_dim]
    log_var = head[:, latent_dim:]
    # reparameterize: z = mu + exp(0.5 * log_var) * eps    (kept in f32)
    z = mu + jnp.exp(0.5 * log_var) * eps_ref[...]

    # Single lane-packed latent writeback: [mu | log_var | z] -> one DMA.
    lat_ref[...] = jnp.concatenate([head, z], axis=1)

    # ---- decoder: (Linear + act)* with final Sigmoid -------------------------
    h = z.astype(jnp.bfloat16)
    for li, (w_ref, b_ref) in enumerate(dec):
        a = jnp.dot(h, w_ref[...], preferred_element_type=jnp.float32)
        a = a + b_ref[...]
        if li < n_dec - 1:
            h = _apply_act(a, act).astype(jnp.bfloat16)
        else:
            # final sigmoid via approx reciprocal; clamp the tiny approx
            # overshoot so the output stays in [0, 1].
            h = jnp.minimum(_sigmoid_approx(a), 1.0)
    xhat_ref[...] = h.astype(jnp.bfloat16)                # bf16 writeback


class VanillaVAEPallas:
    """Pallas-TPU implementation of the PyTorch VanillaVAE forward pass."""

    def __init__(self, key, in_size=(4, 16, 16), sizes=(1024, 128, 16),
                 act="ReLU"):
        assert math.prod(in_size) == sizes[0]
        assert act in ("ReLU", "Sigmoid", "Tanh")
        self.in_size = tuple(in_size)
        self.sizes = list(sizes)
        self.act = act
        self.latent_dim = sizes[-1]

        keys = iter(jax.random.split(key, 4 * len(sizes) + 8))

        def linear(fan_in, fan_out):
            # PyTorch nn.Linear default init: U(-1/sqrt(fan_in), 1/sqrt(fan_in))
            bound = 1.0 / math.sqrt(fan_in)
            w = jax.random.uniform(next(keys), (fan_in, fan_out), jnp.float32,
                                   -bound, bound)
            b = jax.random.uniform(next(keys), (1, fan_out), jnp.float32,
                                   -bound, bound)
            return w, b

        # encoder: Linear(sizes[i], sizes[i+1]) for i in [0, len-2)
        self.enc = []
        for i in range(len(sizes) - 2):
            w, b = linear(sizes[i], sizes[i + 1])
            self.enc.append({"w": w.astype(jnp.bfloat16), "b": b})

        # fused head: [fc_mu | fc_sigma], both Linear(sizes[-2], sizes[-1])
        w_mu, b_mu = linear(sizes[-2], sizes[-1])
        w_lv, b_lv = linear(sizes[-2], sizes[-1])
        self.head_w = jnp.concatenate([w_mu, w_lv], axis=1).astype(jnp.bfloat16)
        self.head_b = jnp.concatenate([b_mu, b_lv], axis=1)

        # decoder: Linear(sizes[-i], sizes[-i-1]) for i in [1, len)
        self.dec = []
        for i in range(1, len(sizes)):
            w, b = linear(sizes[-i], sizes[-i - 1])
            self.dec.append({"w": w.astype(jnp.bfloat16), "b": b})

    # ---------------------------------------------------------------------
    def forward(self, x, eps_key):
        B = x.shape[0]
        D0 = self.sizes[0]
        L = self.latent_dim

        x_flat = x.reshape(B, D0).astype(jnp.bfloat16)    # nn.Flatten
        eps = jax.random.normal(eps_key, (B, L), jnp.float32)

        tile, Bp = _choose_tile(B)
        if Bp != B:
            x_flat = jnp.pad(x_flat, ((0, Bp - B), (0, 0)))
            eps = jnp.pad(eps, ((0, Bp - B), (0, 0)))

        def _rowspec(n):
            return pl.BlockSpec((tile, n), lambda i: (i, 0))

        def _wspec(arr):
            # full-array block, constant index_map -> weights stay resident
            return pl.BlockSpec(arr.shape, lambda i: (0, 0))

        args = [x_flat]
        in_specs = [_rowspec(D0)]
        for layer in self.enc:
            args += [layer["w"], layer["b"]]
            in_specs += [_wspec(layer["w"]), _wspec(layer["b"])]
        args += [self.head_w, self.head_b]
        in_specs += [_wspec(self.head_w), _wspec(self.head_b)]
        for layer in self.dec:
            args += [layer["w"], layer["b"]]
            in_specs += [_wspec(layer["w"]), _wspec(layer["b"])]
        args.append(eps)
        in_specs.append(_rowspec(L))

        out_shape = (jax.ShapeDtypeStruct((Bp, D0), jnp.bfloat16),
                     jax.ShapeDtypeStruct((Bp, 3 * L), jnp.float32))
        out_specs = (_rowspec(D0), _rowspec(3 * L))

        kernel = functools.partial(
            _vanilla_vae_kernel, n_enc=len(self.enc), n_dec=len(self.dec),
            latent_dim=L, act=self.act)

        x_hat_flat, lat = pl.pallas_call(
            kernel,
            out_shape=out_shape,
            grid=(Bp // tile,),
            in_specs=in_specs,
            out_specs=out_specs,
            compiler_params=pltpu.CompilerParams(
                dimension_semantics=("parallel",)),
        )(*args)

        x_hat = x_hat_flat[:B].astype(jnp.float32).reshape(B, *self.in_size)
        mu = lat[:B, :L]
        log_var = lat[:B, L:2 * L]
        z = lat[:B, 2 * L:]
        return x_hat, (z, mu, log_var)

    # ---------------------------------------------------------------------
    def reference_forward(self, x, eps_key):
        """Plain-JAX reference with matching bf16 cast points (for checking)."""
        act_fn = {"ReLU": jax.nn.relu, "Sigmoid": jax.nn.sigmoid,
                  "Tanh": jnp.tanh}[self.act]
        B = x.shape[0]
        h = x.reshape(B, self.sizes[0]).astype(jnp.bfloat16)
        for layer in self.enc:
            a = jnp.dot(h, layer["w"],
                        preferred_element_type=jnp.float32) + layer["b"]
            h = act_fn(a).astype(jnp.bfloat16)
        head = jnp.dot(h, self.head_w,
                       preferred_element_type=jnp.float32) + self.head_b
        mu = head[:, :self.latent_dim]
        log_var = head[:, self.latent_dim:]
        eps = jax.random.normal(eps_key, (B, self.latent_dim), jnp.float32)
        z = mu + jnp.exp(0.5 * log_var) * eps
        h = z.astype(jnp.bfloat16)
        for li, layer in enumerate(self.dec):
            a = jnp.dot(h, layer["w"],
                        preferred_element_type=jnp.float32) + layer["b"]
            if li < len(self.dec) - 1:
                h = act_fn(a).astype(jnp.bfloat16)
            else:
                h = jax.nn.sigmoid(a)
        return h.reshape(B, *self.in_size), (z, mu, log_var)


if __name__ == "__main__":
    key = jax.random.PRNGKey(0)
    k_param, k_x, k_eps = jax.random.split(key, 3)

    in_size = (4, 16, 16)                 # prod = 1024 = sizes[0]
    sizes = (1024, 128, 16)               # [input, hidden, latent]
    B = 32                                # -> tile=16, 2 parallel grid steps

    model = VanillaVAEPallas(k_param, in_size=in_size, sizes=sizes, act="ReLU")
    x = jax.random.normal(k_x, (B, *in_size), jnp.float32)

    x_hat, (z, mu, log_var) = model.forward(x, k_eps)
    jax.block_until_ready((x_hat, z, mu, log_var))

    # shape / sanity checks
    assert x_hat.shape == (B, *in_size)
    L = sizes[-1]
    assert z.shape == (B, L) and mu.shape == (B, L) and log_var.shape == (B, L)
    assert bool(jnp.all(jnp.isfinite(x_hat)))
    assert bool(jnp.all((x_hat >= 0.0) & (x_hat <= 1.0)))     # sigmoid output

    # numerical check against a plain-JAX reference with identical precision
    x_hat_r, (z_r, mu_r, lv_r) = model.reference_forward(x, k_eps)
    assert bool(jnp.allclose(x_hat, x_hat_r, atol=5e-2, rtol=5e-2))
    assert bool(jnp.allclose(mu, mu_r, atol=5e-2, rtol=5e-2))
    assert bool(jnp.allclose(log_var, lv_r, atol=5e-2, rtol=5e-2))
    assert bool(jnp.allclose(z, z_r, atol=5e-2, rtol=5e-2))

    print("KERNEL_OK")
</pallas_src>

<mosaic_0001>
module attributes {stable_mosaic.version = 11 : i64} {
  func.func @_vanilla_vae_kernel(%arg0: i32, %arg1: memref<16x1024xbf16, #tpu.memory_space<vmem>>, %arg2: memref<1024x128xbf16, #tpu.memory_space<vmem>>, %arg3: memref<1x128xf32, #tpu.memory_space<vmem>>, %arg4: memref<128x32xbf16, #tpu.memory_space<vmem>>, %arg5: memref<1x32xf32, #tpu.memory_space<vmem>>, %arg6: memref<16x128xbf16, #tpu.memory_space<vmem>>, %arg7: memref<1x128xf32, #tpu.memory_space<vmem>>, %arg8: memref<128x1024xbf16, #tpu.memory_space<vmem>>, %arg9: memref<1x1024xf32, #tpu.memory_space<vmem>>, %arg10: memref<16x16xf32, #tpu.memory_space<vmem>>, %arg11: memref<16x1024xbf16, #tpu.memory_space<vmem>>, %arg12: memref<16x48xf32, #tpu.memory_space<vmem>>) attributes {dimension_semantics = [#tpu.dimension_semantics<parallel>], iteration_bounds = array<i64: 2>, scalar_prefetch = 0 : i64, scratch_operands = 0 : i64, tpu.core_type = #tpu.core_type<tc>, window_params = [{transform_indices = @transform_0, window_bounds = array<i64: 16, 1024>}, {pipeline_mode = #tpu.pipeline_mode<synchronous>, transform_indices = @transform_1, window_bounds = array<i64: 1024, 128>}, {pipeline_mode = #tpu.pipeline_mode<synchronous>, transform_indices = @transform_2, window_bounds = array<i64: 1, 128>}, {pipeline_mode = #tpu.pipeline_mode<synchronous>, transform_indices = @transform_3, window_bounds = array<i64: 128, 32>}, {pipeline_mode = #tpu.pipeline_mode<synchronous>, transform_indices = @transform_4, window_bounds = array<i64: 1, 32>}, {pipeline_mode = #tpu.pipeline_mode<synchronous>, transform_indices = @transform_5, window_bounds = array<i64: 16, 128>}, {pipeline_mode = #tpu.pipeline_mode<synchronous>, transform_indices = @transform_6, window_bounds = array<i64: 1, 128>}, {pipeline_mode = #tpu.pipeline_mode<synchronous>, transform_indices = @transform_7, window_bounds = array<i64: 128, 1024>}, {pipeline_mode = #tpu.pipeline_mode<synchronous>, transform_indices = @transform_8, window_bounds = array<i64: 1, 1024>}, {transform_indices = @transform_9, window_bounds = array<i64: 16, 16>}, {transform_indices = @transform_10, window_bounds = array<i64: 16, 1024>}, {transform_indices = @transform_11, window_bounds = array<i64: 16, 48>}]} {
    %c0 = arith.constant 0 : index
    %c0_0 = arith.constant 0 : index
    %0 = vector.load %arg1[%c0, %c0_0] : memref<16x1024xbf16, #tpu.memory_space<vmem>>, vector<16x1024xbf16>
    %c0_1 = arith.constant 0 : index
    %c0_2 = arith.constant 0 : index
    %1 = vector.load %arg2[%c0_1, %c0_2] : memref<1024x128xbf16, #tpu.memory_space<vmem>>, vector<1024x128xbf16>
    %cst = arith.constant dense<0.000000e+00> : vector<16x128xf32>
    %2 = tpu.matmul %0, %1, %cst {dimension_numbers = #tpu.dot_dimension_numbers<[1], [0], [0], [1], [0, 0, 1, 1], [], []>} : vector<16x1024xbf16>, vector<1024x128xbf16>, vector<16x128xf32> -> vector<16x128xf32>
    %c0_3 = arith.constant 0 : index
    %c0_4 = arith.constant 0 : index
    %3 = vector.load %arg3[%c0_3, %c0_4] : memref<1x128xf32, #tpu.memory_space<vmem>>, vector<1x128xf32>
    %4 = vector.broadcast %3 : vector<1x128xf32> to vector<16x128xf32>
    %5 = arith.addf %2, %4 : vector<16x128xf32>
    %cst_5 = arith.constant 0.000000e+00 : f32
    %6 = vector.broadcast %cst_5 : f32 to vector<16x128xf32>
    %7 = arith.maximumf %5, %6 : vector<16x128xf32>
    %8 = arith.truncf %7 : vector<16x128xf32> to vector<16x128xbf16>
    %c0_6 = arith.constant 0 : index
    %c0_7 = arith.constant 0 : index
    %9 = vector.load %arg4[%c0_6, %c0_7] : memref<128x32xbf16, #tpu.memory_space<vmem>>, vector<128x32xbf16>
    %cst_8 = arith.constant dense<0.000000e+00> : vector<16x32xf32>
    %10 = tpu.matmul %8, %9, %cst_8 {dimension_numbers = #tpu.dot_dimension_numbers<[1], [0], [0], [1], [0, 0, 1, 1], [], []>} : vector<16x128xbf16>, vector<128x32xbf16>, vector<16x32xf32> -> vector<16x32xf32>
    %c0_9 = arith.constant 0 : index
    %c0_10 = arith.constant 0 : index
    %11 = vector.load %arg5[%c0_9, %c0_10] : memref<1x32xf32, #tpu.memory_space<vmem>>, vector<1x32xf32>
    %12 = vector.broadcast %11 : vector<1x32xf32> to vector<16x32xf32>
    %13 = arith.addf %10, %12 : vector<16x32xf32>
    %14 = vector.extract_strided_slice %13 {offsets = [0, 0], sizes = [16, 16], strides = [1, 1]} : vector<16x32xf32> to vector<16x16xf32>
    %15 = vector.extract_strided_slice %13 {offsets = [0, 16], sizes = [16, 16], strides = [1, 1]} : vector<16x32xf32> to vector<16x16xf32>
    %cst_11 = arith.constant 5.000000e-01 : f32
    %16 = vector.broadcast %cst_11 : f32 to vector<16x16xf32>
    %17 = arith.mulf %16, %15 : vector<16x16xf32>
    %18 = math.exp %17 : vector<16x16xf32>
    %c0_12 = arith.constant 0 : index
    %c0_13 = arith.constant 0 : index
    %19 = vector.load %arg10[%c0_12, %c0_13] : memref<16x16xf32, #tpu.memory_space<vmem>>, vector<16x16xf32>
    %20 = arith.mulf %18, %19 : vector<16x16xf32>
    %21 = arith.addf %14, %20 : vector<16x16xf32>
    %22 = tpu.concatenate %13, %21 in 1 : vector<16x32xf32>, vector<16x16xf32> -> vector<16x48xf32>
    %c0_14 = arith.constant 0 : index
    %c0_15 = arith.constant 0 : index
    %23 = vector.load %arg12[%c0_14, %c0_15] : memref<16x48xf32, #tpu.memory_space<vmem>>, vector<16x48xf32>
    tpu.vector_store %arg12[%c0_14, %c0_15], %22 {strides = array<i32>} : memref<16x48xf32, #tpu.memory_space<vmem>>, vector<16x48xf32>,
    %24 = arith.truncf %21 : vector<16x16xf32> to vector<16x16xbf16>
    %c0_16 = arith.constant 0 : index
    %c0_17 = arith.constant 0 : index
    %25 = vector.load %arg6[%c0_16, %c0_17] : memref<16x128xbf16, #tpu.memory_space<vmem>>, vector<16x128xbf16>
    %cst_18 = arith.constant dense<0.000000e+00> : vector<16x128xf32>
    %26 = tpu.matmul %24, %25, %cst_18 {dimension_numbers = #tpu.dot_dimension_numbers<[1], [0], [0], [1], [0, 0, 1, 1], [], []>} : vector<16x16xbf16>, vector<16x128xbf16>, vector<16x128xf32> -> vector<16x128xf32>
    %c0_19 = arith.constant 0 : index
    %c0_20 = arith.constant 0 : index
    %27 = vector.load %arg7[%c0_19, %c0_20] : memref<1x128xf32, #tpu.memory_space<vmem>>, vector<1x128xf32>
    %28 = vector.broadcast %27 : vector<1x128xf32> to vector<16x128xf32>
    %29 = arith.addf %26, %28 : vector<16x128xf32>
    %cst_21 = arith.constant 0.000000e+00 : f32
    %30 = vector.broadcast %cst_21 : f32 to vector<16x128xf32>
    %31 = arith.maximumf %29, %30 : vector<16x128xf32>
    %32 = arith.truncf %31 : vector<16x128xf32> to vector<16x128xbf16>
    %c0_22 = arith.constant 0 : index
    %c0_23 = arith.constant 0 : index
    %33 = vector.load %arg8[%c0_22, %c0_23] : memref<128x1024xbf16, #tpu.memory_space<vmem>>, vector<128x1024xbf16>
    %cst_24 = arith.constant dense<0.000000e+00> : vector<16x1024xf32>
    %34 = tpu.matmul %32, %33, %cst_24 {dimension_numbers = #tpu.dot_dimension_numbers<[1], [0], [0], [1], [0, 0, 1, 1], [], []>} : vector<16x128xbf16>, vector<128x1024xbf16>, vector<16x1024xf32> -> vector<16x1024xf32>
    %c0_25 = arith.constant 0 : index
    %c0_26 = arith.constant 0 : index
    %35 = vector.load %arg9[%c0_25, %c0_26] : memref<1x1024xf32, #tpu.memory_space<vmem>>, vector<1x1024xf32>
    %36 = vector.broadcast %35 : vector<1x1024xf32> to vector<16x1024xf32>
    %37 = arith.addf %34, %36 : vector<16x1024xf32>
    %cst_27 = arith.constant 0.000000e+00 : f32
    %38 = vector.broadcast %cst_27 : f32 to vector<16x1024xf32>
    %39 = arith.subf %38, %37 : vector<16x1024xf32>
    %40 = math.exp %39 : vector<16x1024xf32>
    %cst_28 = arith.constant 1.000000e+00 : f32
    %41 = vector.broadcast %cst_28 : f32 to vector<16x1024xf32>
    %42 = arith.addf %41, %40 : vector<16x1024xf32>
    %43 = tpu.reciprocal %42 {approx = true} : vector<16x1024xf32> -> vector<16x1024xf32>
    %cst_29 = arith.constant 1.000000e+00 : f32
    %44 = vector.broadcast %cst_29 : f32 to vector<16x1024xf32>
    %45 = arith.minimumf %43, %44 : vector<16x1024xf32>
    %46 = arith.truncf %45 : vector<16x1024xf32> to vector<16x1024xbf16>
    %c0_30 = arith.constant 0 : index
    %c0_31 = arith.constant 0 : index
    %47 = vector.load %arg11[%c0_30, %c0_31] : memref<16x1024xbf16, #tpu.memory_space<vmem>>, vector<16x1024xbf16>
    tpu.vector_store %arg11[%c0_30, %c0_31], %46 {strides = array<i32>} : memref<16x1024xbf16, #tpu.memory_space<vmem>>, vector<16x1024xbf16>,
    return
  }
  func.func @transform_0(%arg0: i32) -> (i32, i32) {
    %c0_i32 = arith.constant 0 : i32
    %c0_i32_0 = arith.constant 0 : i32
    return %arg0, %c0_i32 : i32, i32
  }
  func.func @transform_1(%arg0: i32) -> (i32, i32) {
    %c0_i32 = arith.constant 0 : i32
    %c0_i32_0 = arith.constant 0 : i32
    %c0_i32_1 = arith.constant 0 : i32
    return %c0_i32, %c0_i32_0 : i32, i32
  }
  func.func @transform_2(%arg0: i32) -> (i32, i32) {
    %c0_i32 = arith.constant 0 : i32
    %c0_i32_0 = arith.constant 0 : i32
    %c0_i32_1 = arith.constant 0 : i32
    return %c0_i32, %c0_i32_0 : i32, i32
  }
  func.func @transform_3(%arg0: i32) -> (i32, i32) {
    %c0_i32 = arith.constant 0 : i32
    %c0_i32_0 = arith.constant 0 : i32
    %c0_i32_1 = arith.constant 0 : i32
    return %c0_i32, %c0_i32_0 : i32, i32
  }
  func.func @transform_4(%arg0: i32) -> (i32, i32) {
    %c0_i32 = arith.constant 0 : i32
    %c0_i32_0 = arith.constant 0 : i32
    %c0_i32_1 = arith.constant 0 : i32
    return %c0_i32, %c0_i32_0 : i32, i32
  }
  func.func @transform_5(%arg0: i32) -> (i32, i32) {
    %c0_i32 = arith.constant 0 : i32
    %c0_i32_0 = arith.constant 0 : i32
    %c0_i32_1 = arith.constant 0 : i32
    return %c0_i32, %c0_i32_0 : i32, i32
  }
  func.func @transform_6(%arg0: i32) -> (i32, i32) {
    %c0_i32 = arith.constant 0 : i32
    %c0_i32_0 = arith.constant 0 : i32
    %c0_i32_1 = arith.constant 0 : i32
    return %c0_i32, %c0_i32_0 : i32, i32
  }
  func.func @transform_7(%arg0: i32) -> (i32, i32) {
    %c0_i32 = arith.constant 0 : i32
    %c0_i32_0 = arith.constant 0 : i32
    %c0_i32_1 = arith.constant 0 : i32
    return %c0_i32, %c0_i32_0 : i32, i32
  }
  func.func @transform_8(%arg0: i32) -> (i32, i32) {
    %c0_i32 = arith.constant 0 : i32
    %c0_i32_0 = arith.constant 0 : i32
    %c0_i32_1 = arith.constant 0 : i32
    return %c0_i32, %c0_i32_0 : i32, i32
  }
  func.func @transform_9(%arg0: i32) -> (i32, i32) {
    %c0_i32 = arith.constant 0 : i32
    %c0_i32_0 = arith.constant 0 : i32
    return %arg0, %c0_i32 : i32, i32
  }
  func.func @transform_10(%arg0: i32) -> (i32, i32) {
    %c0_i32 = arith.constant 0 : i32
    %c0_i32_0 = arith.constant 0 : i32
    return %arg0, %c0_i32 : i32, i32
  }
  func.func @transform_11(%arg0: i32) -> (i32, i32) {
    %c0_i32 = arith.constant 0 : i32
    %c0_i32_0 = arith.constant 0 : i32
    return %arg0, %c0_i32 : i32, i32
  }
}

</mosaic_0001>

<bundles_post_ra>
// kernel: tpu_custom_call.1
= control target key start
LH: loop header
LB: loop body
LE: loop exit
PB: predicated region body
PF: predicated region fallthrough
CT: control target
= control target key end

     0   :  { %s3489_s0 = inlined_call_operand.hbm [shape: bf16[32,1024], index: 0, kind: input, shape index: {}]   ;;  %s3490_s1 = inlined_call_operand.hbm [shape: bf16[1024,128], index: 1, kind: input, shape index: {}]   ;;  %s3491_s2 = inlined_call_operand.vmem [shape: f32[1,128], index: 2, kind: input, shape index: {}]   ;;  %s3492_s3 = inlined_call_operand.vmem [shape: bf16[128,32], index: 3, kind: input, shape index: {}]   ;;  %s3493_s4 = inlined_call_operand.vmem [shape: f32[1,32], index: 4, kind: input, shape index: {}]   ;;  %s3494_s5 = inlined_call_operand.vmem [shape: bf16[16,128], index: 5, kind: input, shape index: {}]   ;;  %s3495_s6 = inlined_call_operand.vmem [shape: f32[1,128], index: 6, kind: input, shape index: {}]   ;;  %s3496_s7 = inlined_call_operand.hbm [shape: bf16[128,1024], index: 7, kind: input, shape index: {}]   ;;  %s3497_s8 = inlined_call_operand.vmem [shape: f32[1,1024], index: 8, kind: input, shape index: {}]   ;;  %s3498_s9 = inlined_call_operand.vmem [shape: f32[32,16], index: 9, kind: input, shape index: {}]   ;;  %s3499_s10 = inlined_call_operand.hbm [shape: bf16[32,1024], index: 10, kind: output, shape index: {0}]   ;;  %s3500_s11 = inlined_call_operand.hbm [shape: f32[32,48], index: 11, kind: output, shape index: {1}]  }
   0x1   :  { %3510 = sst [smem:[#allocation18_spill]] %s3490_s1 }
   0x2   :  { %3511 = sst [smem:[#allocation19_spill]] %s3496_s7 }
   0x3   :  { %17 = vsyncpa [#allocation3], 0 }
   0x4   :  { %19 = vsyncpa [#allocation3 + $0x1], 0 }
   0x5   :  { %20 = vsyncpa [#allocation6], 0 }
   0x6   :  { %21 = vsyncpa [#allocation4], 0 }
   0x7   :  { %23 = vsyncpa [#allocation4 + $0x1], 0 }
   0x8   :  { %24 = vsyncpa [#allocation10], 0 }
   0x9   :  { %26 = vsyncpa [#allocation10 + $0x1], 0  ;;  %s3151_s17 = smov 0   ;;  %s3153_s18 = smov 0  }
   0xa   :  { %s3155_s19 = smov 0   ;;  %s3157_s20 = smov 0  }
   0xb LB: > { %3512 = sst [smem:[#allocation15_spill]] %s3067_s19  ;;  %s3172_s21 = sadd.s32 4294967295, %s3071_s20   ;;  %s3071_s20 = sphi %s3157_s20, %s3533_s20   ;;  %s3067_s19 = sphi %s3155_s19, %s3535_s19   ;;  %s3063_s18 = sphi %s3153_s18, %s3537_s18   ;;  %s3059_s17 = sphi %s3151_s17, %s3536_s17  }
   0xc   : > { %s2346_s22 = sadd.s32 4294967294, %s3071_s20   ;;  %p52_p0 = scmp.ne.s32.totalorder %s3063_s18, %s3059_s17 }
   0xd   : > { %p3501_p1 = scmp.eq.s32.totalorder %s3172_s21, 0  ;;  %p276_p3 = scmp.eq.s32.totalorder %s2346_s22, 1 }
   0xe   : > { %p2347_p5 = scmp.ge.s32.totalorder %s3071_s20, 1  ;;  %p309_p7 = scmp.lt.s32.totalorder %s3071_s20, 3 }
   0xf   : > { %p3181_p4 = por %p3501_p1, %p52_p0  ;;  %p3186_p6 = por %p276_p3, %p52_p0 }
  0x10   : > { %p3191_p8 = pnand %p2347_p5, %p309_p7  ;;  %s3073_s26 = smov [#allocation5]  }
  0x11   : > { %s3513_s23 = scalar_select %p3181_p4, 1, 0 }
  0x12   : > { %s3514_s24 = scalar_select %p3186_p6, 1, 0 }
  0x13   : > { %s3515_s25 = scalar_select %p3191_p8, 1, 0 }
  0x14   : > { %s321_s27 = sshll.u32 %s3073_s26, 4  ;;  %p2681_p9 = pneg %p3191_p8  ;;  %s322_s27 = int_to_ptr.vmem [resolvable:$true] %s321_s27 }
  0x15   : > { %s3074_s29 = smov [#allocation7]   ;;  %s2904_s12 = scalar_lea.vmem %s322_s27, 8192 }
  0x16   : > { %p3200_p11 = pnand %p2681_p9, %p3501_p1  ;;  %s349_s30 = sshll.u32 %s3074_s29, 4  ;;  %s350_s30 = int_to_ptr.vmem [resolvable:$true] %s349_s30 }
  0x17   : > { %p2905_p13 = scmp.ne.s32.totalorder %s322_s27, %s2904_s12  ;;  %p2912_p5 = scmp.lt.s32.totalorder %s322_s27, %s322_s27 }
  0x18   : > { %p2895_p12 = pneg %p3200_p11  ;;  %p2913_p7 = scmp.lt.s32.totalorder %s2904_s12, %s2904_s12 }
  0x1a   : > { %p2907_p0 = pnand %p2905_p13, %p2895_p12  ;;  %p2914_p10 = por %p2913_p7, %p2912_p5 }
  0x1c   : > { %p2908_p3 = pneg %p2907_p0 }
  0x1e   : > { %p2915_p9 = pnand %p2914_p10, %p2908_p3 }
  0x20   : > { %2918 = shalt.err (!%p2915_p9)
}
  0x21   : > { %s3075_s13 = smov 64   ;;  %s3076_s14 = smov 4  }
  0x22   : > { %s3517_s1 = sld [smem:[#allocation18_spill]]  ;;  %s2930_s22 = scalar_lea.vmem %s350_s30, 8192 }
  0x23   : > { %p2931_p1 = scmp.ne.s32.totalorder %s350_s30, %s2930_s22  ;;  %p2938_p2 = scmp.lt.s32.totalorder %s350_s30, %s350_s30 }
  0x24   : > { %p2939_p6 = scmp.lt.s32.totalorder %s2930_s22, %s2930_s22 }
  0x25   : > { %p2933_p13 = pnand %p2931_p1, %p2895_p12 }
  0x26   : > { %p2940_p5 = por %p2939_p6, %p2938_p2 }
  0x27   : > { %p2934_p0 = pneg %p2933_p13 }
  0x28   : > { %2684 = dma.hbm_to_vmem [thread:$0]  (!%p3200_p11), %s3517_s1, 8192, %s322_s27, [#allocation6], %s3075_s13, %s3075_s13, %s3076_s14  }
  0x29   : > { %p2941_p10 = pnand %p2940_p5, %p2934_p0 }
  0x2b   : > { %2944 = shalt.err (!%p2941_p10)
}
  0x2c   : > { %s3502_s26 = smov 512   ;;  %s3503_s27 = smov 32  }
  0x2d   : > { %s3518_s7 = sld [smem:[#allocation19_spill]]  ;;  %s3226_s13 = sadd.s32 1, %s3071_s20  }
  0x2e   : > { %3519 = sst [smem:[#allocation16_spill]] %s3226_s13  ;;  %s36_s14 = ssub.s32 %s3071_s20, %s3226_s13 }
  0x2f   : > { %p37_p1 = scmp.eq.s32.totalorder %s36_s14, 0  ;;  %s39_s15 = sadd.s32 1, %s3067_s19 }
  0x30   : > { %p46_p2 = scmp.ne.s32.totalorder %s3067_s19, %s3063_s18  ;;  %p47_p6 = scmp.eq.s32.totalorder %s3071_s20, 0 }
  0x31   : > { %s3235_s16 = scalar_select %p37_p1, %s3067_s19, %s39_s15  }
  0x32   : > { %p48_p12 = por %p47_p6, %p46_p2  ;;  %p3521_p3 = scmp.eq.s32.totalorder %s3172_s21, 1 }
  0x33   : > { %2687 = dma.hbm_to_vmem [thread:$0]  (!%p3200_p11), %s3518_s7, 8192, %s350_s30, [#allocation6], %s3502_s26, %s3502_s26, %s3503_s27  }
  0x34   : > { %3520 = sst [smem:[#allocation17_spill]] %s3235_s16  ;;  %p3239_p7 = por %p3521_p3, %p46_p2 }
  0x35   : > { %p2701_p9 = scmp.lt.s32.totalorder %s3071_s20, 2  ;;  %s366_s22 = sand.u32 1, %s3067_s19  }
  0x36   : > { %s3522_s28 = scalar_select %p3239_p7, 1, 0 }
  0x37   : > { %s2351_s29 = sshll.u32 %s366_s22, 6  ;;  %s2530_s30 = sshll.u32 %s3071_s20, 10 }
  0x38   : > { %s3249_s27 = scalar_lea.hbm %s3489_s0, %s2530_s30  ;;  %s370_s14 = scalar_lea.vmem [#allocation2], %s2351_s29 }
  0x39   : > { %s378_s15 = sshll.u32 %s370_s14, 4  ;;  %p3253_p11 = pnand %p2701_p9, %p48_p12  ;;  %s3251_s15 = int_to_ptr.vmem [resolvable:$true] %s378_s15 }
  0x3a   : > { %s3257_s7 = scalar_lea.sflag [#allocation3], %s366_s22  ;;  %s2945_s16 = scalar_lea.hbm %s3249_s27, 1024 }
  0x3b   : > { %p2946_p13 = scmp.ne.s32.totalorder %s3249_s27, %s2945_s16  ;;  %p2947_p0 = pneg %p3253_p11 }
  0x3c   : > { %s2950_s29 = scalar_lea.hbm %s3489_s0, 2048  ;;  %p2951_p1 = scmp.lt.s32.totalorder %s3249_s27, %s3489_s0 }
  0x3d   : > { %p2948_p5 = pnand %p2947_p0, %p2946_p13  ;;  %p2952_p2 = scmp.lt.s32.totalorder %s2950_s29, %s2945_s16 }
  0x3f   : > { %p2949_p10 = pneg %p2948_p5  ;;  %p2953_p6 = por %p2952_p2, %p2951_p1 }
  0x41   : > { %p2954_p12 = pnand %p2953_p6, %p2949_p10 }
  0x43   : > { %2957 = shalt.err (!%p2954_p12)
}
  0x44   : > { %s2958_s22 = scalar_lea.vmem %s3251_s15, 1024  ;;  %s3079_s19 = smov [#allocation2]  }
  0x45   : > { %p2959_p3 = scmp.ne.s32.totalorder %s3251_s15, %s2958_s22  ;;  %s2963_s13 = sshll.u32 %s3079_s19, 4  ;;  %s2964_s13 = int_to_ptr.vmem [resolvable:$false] %s2963_s13 }
  0x46   : > { %s2965_s26 = scalar_lea.vmem %s2964_s13, 2048  ;;  %p2966_p5 = scmp.lt.s32.totalorder %s3251_s15, %s2964_s13 }
  0x47   : > { %p2961_p9 = pnand %p2959_p3, %p2947_p0  ;;  %p2967_p7 = scmp.lt.s32.totalorder %s2965_s26, %s2958_s22 }
  0x49   : > { %p2962_p13 = pneg %p2961_p9  ;;  %p2968_p4 = por %p2967_p7, %p2966_p5 }
  0x4b   : > { %p2969_p8 = pnand %p2968_p4, %p2962_p13 }
  0x4d   : > { %2972 = shalt.err (!%p2969_p8)
}
  0x4e   : > { %s3524_s16 = smov 32   ;;  %s3525_s30 = smov 512  }
  0x4f   : > { %2691 = dma.hbm_to_vmem [thread:$0]  (!%p3253_p11), %s3249_s27, 1024, %s3251_s15, %s3257_s7, %s3525_s30, %s3525_s30, %s3524_s16  }
  0x50   : > { %p3526_p0 = scmp.ne.s32.totalorder %s3515_s25, 0 }
  0x51   : > { %s3284_s19 = sand.u32 (!%p3526_p0), 1, %s3063_s18   ;;  %p3527_p4 = scmp.ne.s32.totalorder (!%p3526_p0), %s3513_s23, 0 }
  0x52   : > { %399 = sbr.rel (%p3526_p0) target bundleno = 1195 (0x4ab), region = 60  ;;  %s2356_s13 = sshll.u32 (!%p3526_p0), %s3284_s19, 6 }
  0x53   : > { %s402_s29 = scalar_lea.sflag (!%p3526_p0), [#allocation3], %s3284_s19  ;;  %s3290_s1 = scalar_lea.vmem (!%p3526_p0), [#allocation2], %s2356_s13 }
  0x57   : > { %3042 = dma.done.wait (%p3527_p4), %s402_s29, 1024  }
  0x58   : > { %3044 = vsyncadd (%p3527_p4), %s402_s29, 4294966272  ;;  %p3528_p8 = scmp.eq.s32.totalorder %s3172_s21, 0 }
  0x5a   : > { %3046 = dma.done.wait (%p3528_p8), [#allocation6], 16384   ;;  %p3529_p7 = pmov %p3528_p8 }
  0x5b   : > { %v2752_v0 = vld [vmem:[#allocation5 + $0x78] sm:$0xff]   ;;  %v2756_v4 = vld [vmem:[#allocation5 + $0x70] sm:$0xff]   ;;  %v2760_v8 = vld [vmem:[#allocation5 + $0x68] sm:$0xff]   ;;  %vm3081_vm0 = vmmov 0   ;;  %s2361_s27 = sshll.u32 %s3172_s21, 1  ;;  %s3082_s26 = smov 16  }
  0x5c   : > { %3048 = vsyncadd (%p3529_p7), [#allocation6], 4294950912  ;;  %v2753_v1 = vld [vmem:[#allocation5 + $0xf8] sm:$0xff]   ;;  %2542 = vmatprep.subr.bf16.mxu0 %v2752_v0  ;;  %v2757_v5 = vld [vmem:[#allocation5 + $0xf0] sm:$0xff]   ;;  %p464_p11 = scmp.lt.s32.totalorder %s2361_s27, 3  ;;  %s3083_s25 = smov 112  }
  0x5d   : > { %v2754_v2 = vld [vmem:[#allocation5 + $0x38] sm:$0xff]   ;;  %2564 = vmatprep.subr.bf16.mxu1 %v2753_v1  ;;  %v2758_v6 = vld [vmem:[#allocation5 + $0x30] sm:$0xff]   ;;  %v2761_v9 = vld [vmem:[#allocation5 + $0xe8] sm:$0xff]   ;;  %vm1376_vm1 = vcmask 130048   ;;  %vm1354_vm2 = vcmask 261120   ;;  %vm1357_vm3 = vcmask 392192  }
  0x5e   : > { %v2755_v3 = vld [vmem:[#allocation5 + $0xb8] sm:$0xff]   ;;  %2543 = vmatpush3.bf16.msra.mxu0 %v2754_v2  ;;  %v2759_v7 = vld [vmem:[#allocation5 + $0xb0] sm:$0xff]   ;;  %v2762_v10 = vld [vmem:[#allocation5 + $0x28] sm:$0xff]   ;;  %s3539_s27 = smov (!%p464_p11, %s2361_s27), 3  ;;  %s2541_s16 = sshll.u32 %s3172_s21, 8 }
  0x5f   : > { %2565 = vmatpush3.bf16.msra.mxu1 %v2755_v3  ;;  %2544 = vmatprep.subr.bf16.mxu0 %v2756_v4  ;;  %v2763_v11 = vld [vmem:[#allocation5 + $0xa8] sm:$0xff]   ;;  %v2764_v12 = vld [vmem:[#allocation5 + $0x60] sm:$0xff]   ;;  %v2768_v16 = vld [vmem:[#allocation5 + $0x58] sm:$0xff]   ;;  %s2362_s15 = sshll.u32 %s3539_s27, 3  ;;  %s3084_s27 = smov 32  }
  0x60   : > { %2566 = vmatprep.subr.bf16.mxu1 %v2757_v5  ;;  %v2765_v13 = vld [vmem:[#allocation5 + $0xe0] sm:$0xff]   ;;  %v2769_v17 = vld [vmem:[#allocation5 + $0xd8] sm:$0xff]   ;;  %v2772_v20 = vld [vmem:[#allocation5 + $0x50] sm:$0xff]   ;;  %s467_s22 = scalar_lea.vmem %s3498_s9, %s2362_s15  ;;  %s2360_s15 = sshll.u32 %s3284_s19, 4 }
  0x61   : > { %v2766_v14 = vld [vmem:[#allocation5 + $0x20] sm:$0xff]   ;;  %v2770_v18 = vld [vmem:[#allocation5 + $0x18] sm:$0xff]   ;;  %v2773_v21 = vld [vmem:[#allocation5 + $0xd0] sm:$0xff]   ;;  %s3357_s12 = scalar_lea.vmem [#allocation9], %s2360_s15  ;;  %s2180_s7 = scalar_lea.sflag [#allocation10], %s3284_s19 }
  0x62   : > { %2545 = vmatpush3.bf16.msra.mxu0 %v2758_v6  ;;  %v2767_v15 = vld [vmem:[#allocation5 + $0xa0] sm:$0xff]   ;;  %v2771_v19 = vld [vmem:[#allocation5 + $0x98] sm:$0xff]   ;;  %v2774_v22 = vld [vmem:[#allocation5 + $0x10] sm:$0xff]   ;;  %p3530_p1 = scmp.ne.s32.totalorder %s3522_s28, 0 }
  0x63   : > { %2567 = vmatpush3.bf16.msra.mxu1 %v2759_v7  ;;  %2546 = vmatprep.subr.bf16.mxu0 %v2760_v8  ;;  %v2775_v23 = vld [vmem:[#allocation5 + $0x90] sm:$0xff]   ;;  %v2776_v24 = vld [vmem:[#allocation5 + $0x48] sm:$0xff]   ;;  %v2780_v28 = vld [vmem:[#allocation5 + $0x40] sm:$0xff]  }
  0x64   : > { %2568 = vmatprep.subr.bf16.mxu1 %v2761_v9  ;;  %v2777_v25 = vld [vmem:[#allocation5 + $0xc8] sm:$0xff]   ;;  %v2781_v29 = vld [vmem:[#allocation5 + $0xc0] sm:$0xff]   ;;  %v2784_v40 = vld [vmem:[#allocation5 + $0x178] sm:$0xff]  }
  0x65   : > { %v2778_v26 = vld [vmem:[#allocation5 + $0x8] sm:$0xff]   ;;  %v2782_v30 = vld [vmem:[#allocation5] sm:$0xff]   ;;  %v2785_v41 = vld [vmem:[#allocation5 + $0x1f8] sm:$0xff]  }
  0x66   : > { %2547 = vmatpush3.bf16.msra.mxu0 %v2762_v10  ;;  %v2779_v27 = vld [vmem:[#allocation5 + $0x88] sm:$0xff]   ;;  %v2783_v31 = vld [vmem:[#allocation5 + $0x80] sm:$0xff]   ;;  %v2786_v42 = vld [vmem:[#allocation5 + $0x138] sm:$0xff]  }
  0x67   : > { %2569 = vmatpush3.bf16.msra.mxu1 %v2763_v11  ;;  %2548 = vmatprep.subr.bf16.mxu0 %v2764_v12  ;;  %v472_v32 = vld [vmem:[%s3290_s1] sm:$0xff]  ;;  %v473_v34 = vld [vmem:[%s3290_s1 + $0x8] sm:$0xff]  ;;  %v2787_v43 = vld [vmem:[#allocation5 + $0x1b8] sm:$0xff]  }
  0x68   : > { %2570 = vmatprep.subr.bf16.mxu1 %v2765_v13  ;;  %v476_v33 = vld [vmem:[%s3290_s1 + $0x20] sm:$0xff]  ;;  %v477_v37 = vld [vmem:[%s3290_s1 + $0x28] sm:$0xff]  ;;  %v2788_v44 = vld [vmem:[#allocation5 + $0x170] sm:$0xff]  }
  0x69   : > { %v2364_v35 = vcombine.low %v472_v32, %v476_v33  ;;  %v2365_v36 = vcombine.high %v472_v32, %v476_v33  ;;  %v2366_v38 = vcombine.low %v473_v34, %v477_v37  ;;  %v2367_v39 = vcombine.high %v473_v34, %v477_v37  ;;  %v2789_v45 = vld [vmem:[#allocation5 + $0x1f0] sm:$0xff]   ;;  %v2792_v48 = vld [vmem:[#allocation5 + $0x168] sm:$0xff]   ;;  %v2796_v52 = vld [vmem:[#allocation5 + $0x160] sm:$0xff]  }
  0x6a   : > { %2549 = vmatpush3.bf16.msra.mxu0 %v2766_v14  ;;  %v2790_v46 = vld [vmem:[#allocation5 + $0x130] sm:$0xff]   ;;  %v2793_v49 = vld [vmem:[#allocation5 + $0x1e8] sm:$0xff]   ;;  %v2797_v53 = vld [vmem:[#allocation5 + $0x1e0] sm:$0xff]  }
  0x6b   : > { %2571 = vmatpush3.bf16.msra.mxu1 %v2767_v15  ;;  %2550 = vmatprep.subr.bf16.mxu0 %v2768_v16  ;;  %v2791_v47 = vld [vmem:[#allocation5 + $0x1b0] sm:$0xff]   ;;  %v2794_v50 = vld [vmem:[#allocation5 + $0x128] sm:$0xff]   ;;  %v2798_v54 = vld [vmem:[#allocation5 + $0x120] sm:$0xff]  }
  0x6c   : > { %2572 = vmatprep.subr.bf16.mxu1 %v2769_v17  ;;  %1071 = vmatprep.mubr.bf16.mxu0 %v2365_v36  ;;  %v2795_v51 = vld [vmem:[#allocation5 + $0x1a8] sm:$0xff]   ;;  %v2799_v55 = vld [vmem:[#allocation5 + $0x1a0] sm:$0xff]   ;;  %v2800_v56 = vld [vmem:[#allocation5 + $0x158] sm:$0xff]   ;;  %v3080_v17 = vmov 0.0  }
  0x6d   : > { %1112 = vmatprep.mubr.bf16.mxu1 %v2367_v39  ;;  %v2801_v57 = vld [vmem:[#allocation5 + $0x1d8] sm:$0xff]   ;;  %v2804_v60 = vld [vmem:[#allocation5 + $0x150] sm:$0xff]   ;;  %v2808_v0 = vld [vmem:[#allocation5 + $0x148] sm:$0xff]  }
  0x6e   : > { %2551 = vmatpush3.bf16.msra.mxu0 %v2770_v18  ;;  %v2802_v58 = vld [vmem:[#allocation5 + $0x118] sm:$0xff]   ;;  %v2805_v61 = vld [vmem:[#allocation5 + $0x1d0] sm:$0xff]   ;;  %v2809_v1 = vld [vmem:[#allocation5 + $0x1c8] sm:$0xff]  }
  0x6f   : > { %2573 = vmatpush3.bf16.msra.mxu1 %v2771_v19  ;;  %2552 = vmatprep.subr.bf16.mxu0 %v2772_v20  ;;  %v2803_v59 = vld [vmem:[#allocation5 + $0x198] sm:$0xff]   ;;  %v2806_v62 = vld [vmem:[#allocation5 + $0x110] sm:$0xff]   ;;  %v2810_v2 = vld [vmem:[#allocation5 + $0x108] sm:$0xff]  }
  0x70   : > { %2574 = vmatprep.subr.bf16.mxu1 %v2773_v21  ;;  %v2807_v63 = vld [vmem:[#allocation5 + $0x190] sm:$0xff]   ;;  %v2811_v3 = vld [vmem:[#allocation5 + $0x188] sm:$0xff]   ;;  %v2812_v4 = vld [vmem:[#allocation5 + $0x140] sm:$0xff]  }
  0x71   : > { %v2813_v5 = vld [vmem:[#allocation5 + $0x1c0] sm:$0xff]   ;;  %v474_v8 = vld [vmem:[%s3290_s1 + $0x10] sm:$0xff]  ;;  %v475_v12 = vld [vmem:[%s3290_s1 + $0x18] sm:$0xff] }
  0x72   : > { %2553 = vmatpush3.bf16.msra.mxu0 %v2774_v22  ;;  %v2814_v6 = vld [vmem:[#allocation5 + $0x100] sm:$0xff]   ;;  %v478_v9 = vld [vmem:[%s3290_s1 + $0x30] sm:$0xff]  ;;  %v479_v13 = vld [vmem:[%s3290_s1 + $0x38] sm:$0xff]  ;;  %s3378_s1 = scalar_lea.hbm %s3500_s11, %s2541_s16 }
  0x73   : > { %2575 = vmatpush3.bf16.msra.mxu1 %v2775_v23  ;;  %2554 = vmatprep.subr.bf16.mxu0 %v2776_v24  ;;  %v2815_v7 = vld [vmem:[#allocation5 + $0x180] sm:$0xff]   ;;  %v2368_v10 = vcombine.low %v474_v8, %v478_v9  ;;  %v2369_v11 = vcombine.high %v474_v8, %v478_v9  ;;  %v2370_v14 = vcombine.low %v475_v12, %v479_v13  ;;  %v2816_v16 = vld [vmem:[%s3492_s3 + $0x38] sm:$0xff]   ;;  %v2817_v18 = vld [vmem:[%s3492_s3 + $0x30] sm:$0xff]  }
  0x74   : > { %2576 = vmatprep.subr.bf16.mxu1 %v2777_v25  ;;  %v2371_v15 = vcombine.high %v475_v12, %v479_v13  ;;  %v2818_v19 = vld [vmem:[%s3492_s3 + $0x28] sm:$0xff]   ;;  %v2819_v20 = vld [vmem:[%s3492_s3 + $0x20] sm:$0xff]   ;;  %v2820_v21 = vld [vmem:[%s3492_s3 + $0x18] sm:$0xff]  }
  0x75   : > { %v2821_v22 = vld [vmem:[%s3492_s3 + $0x10] sm:$0xff]   ;;  %v2822_v23 = vld [vmem:[%s3492_s3 + $0x8] sm:$0xff]   ;;  %v2823_v24 = vld [vmem:[%s3492_s3] sm:$0xff]  }
  0x76   : > { %2555 = vmatpush3.bf16.msra.mxu0 %v2778_v26  ;;  %v1324_v25 = vld [vmem:[%s467_s22] sm:$0xff]  ;;  %v1325_v26 = vld [vmem:[%s467_s22 + $0x8] sm:$0xff] }
  0x77   : > { %2577 = vmatpush3.bf16.msra.mxu1 %v2779_v27  ;;  %2556 = vmatprep.subr.bf16.mxu0 %v2780_v28  ;;  %v2363_v34 = vld [vmem:[%s3491_s2] ss:$0 sm:$0xff] }
  0x78   : > { %2578 = vmatprep.subr.bf16.mxu1 %v2781_v29  ;;  %1328 = vrot.lane.b32.xlu0 %v1324_v25, %s3082_s26  ;;  %v1477_v25 = vld [vmem:[#allocation7 + $0x1a8] sm:$0xff] }
  0x7a   : > { %2557 = vmatpush3.bf16.msra.mxu0 %v2782_v30 }
  0x7b   : > { %2579 = vmatpush3.bf16.msra.mxu1 %v2783_v31  ;;  %2586 = vmatprep.subr.bf16.mxu0 %v2784_v40 }
  0x7c   : > { %2608 = vmatprep.subr.bf16.mxu1 %v2785_v41  ;;  %1330 = vrot.lane.b32.xlu0 %v1325_v26, %s3082_s26  ;;  %s2210_s26 = sshll.u32 %s3357_s12, 4  ;;  %s3372_s26 = int_to_ptr.vmem [resolvable:$true] %s2210_s26 }
  0x7d   : > { %1072 = vmatmul.mubr.bf16.vlgmr.msra.gmra.mxu0 %v2364_v35  ;;  %s2973_s23 = scalar_lea.vmem %s3372_s26, 256 }
  0x7e   : > { %1113 = vmatmul.mubr.bf16.vlgmr.msra.gmra.mxu1 %v2366_v38  ;;  %2587 = vmatpush3.bf16.msra.mxu0 %v2786_v42  ;;  %p2974_p10 = scmp.ne.s32.totalorder %s3372_s26, %s2973_s23 }
  0x7f   : > { %2609 = vmatpush3.bf16.msra.mxu1 %v2787_v43  ;;  %2588 = vmatprep.subr.bf16.mxu0 %v2788_v44 }
  0x80   : > { %2610 = vmatprep.subr.bf16.mxu1 %v2789_v45  ;;  %1153 = vmatprep.mubr.bf16.mxu0 %v2369_v11  ;;  %p2975_p2 = pnand %p2974_p10, %p3530_p1 }
  0x81   : > { %1194 = vmatprep.mubr.bf16.mxu1 %v2371_v15 }
  0x82   : > { %2589 = vmatpush3.bf16.msra.mxu0 %v2790_v46  ;;  %p2976_p6 = pneg %p2975_p2 }
  0x83   : > { %2611 = vmatpush3.bf16.msra.mxu1 %v2791_v47  ;;  %2590 = vmatprep.subr.bf16.mxu0 %v2792_v48 }
  0x84   : > { %2612 = vmatprep.subr.bf16.mxu1 %v2793_v49 }
  0x86   : > { %2591 = vmatpush3.bf16.msra.mxu0 %v2794_v50 }
  0x87   : > { %2613 = vmatpush3.bf16.msra.mxu1 %v2795_v51  ;;  %2592 = vmatprep.subr.bf16.mxu0 %v2796_v52 }
  0x88   : > { %2614 = vmatprep.subr.bf16.mxu1 %v2797_v53 }
  0x8a   : > { %2593 = vmatpush3.bf16.msra.mxu0 %v2798_v54 }
  0x8b   : > { %2615 = vmatpush3.bf16.msra.mxu1 %v2799_v55  ;;  %2594 = vmatprep.subr.bf16.mxu0 %v2800_v56 }
  0x8c   : > { %2616 = vmatprep.subr.bf16.mxu1 %v2801_v57 }
  0x8e   : > { %2595 = vmatpush3.bf16.msra.mxu0 %v2802_v58 }
  0x8f   : > { %2617 = vmatpush3.bf16.msra.mxu1 %v2803_v59  ;;  %2596 = vmatprep.subr.bf16.mxu0 %v2804_v60 }
  0x90   : > { %2618 = vmatprep.subr.bf16.mxu1 %v2805_v61 }
  0x92   : > { %2597 = vmatpush3.bf16.msra.mxu0 %v2806_v62 }
  0x93   : > { %2619 = vmatpush3.bf16.msra.mxu1 %v2807_v63  ;;  %2598 = vmatprep.subr.bf16.mxu0 %v2808_v0  ;;  %v2436_v63 = vld [vmem:[%s3493_s4] ss:$0 sm:$0xff] }
  0x94   : > { %2620 = vmatprep.subr.bf16.mxu1 %v2809_v1 }
  0x96   : > { %2599 = vmatpush3.bf16.msra.mxu0 %v2810_v2 }
  0x97   : > { %2621 = vmatpush3.bf16.msra.mxu1 %v2811_v3  ;;  %2600 = vmatprep.subr.bf16.mxu0 %v2812_v4 }
  0x98   : > { %2622 = vmatprep.subr.bf16.mxu1 %v2813_v5 }
  0x9a   : > { %2601 = vmatpush3.bf16.msra.mxu0 %v2814_v6 }
  0x9b   : > { %2623 = vmatpush3.bf16.msra.mxu1 %v2815_v7  ;;  %2641 = vmatprep.subr.bf16.mxu0 %v3080_v17 }
  0x9c   : > { %2661 = vmatprep.subr.bf16.mxu1 %v3080_v17 }
  0x9d   : > { %1154 = vmatmul.mubr.bf16.vlgmr.msra.gmra.mxu0 %v2368_v10  ;;  %v2824_v10 = vld [vmem:[%s3494_s5] sm:$0xff]  }
  0x9e   : > { %1195 = vmatmul.mubr.bf16.vlgmr.msra.gmra.mxu1 %v2370_v14  ;;  %2642 = vmatpush3.bf16.msra.mxu0 %v2816_v16 }
  0x9f   : > { %2643 = vmatprep.subr.bf16.mxu0 %v3080_v17  ;;  %2657 = vmatprep.mubr.msk.bf16.mxu0 %vm3081_vm0, %v3080_v17 }
  0xa0   : > { %2663 = vmatprep.mubr.msk.bf16.mxu1 %vm3081_vm0, %v3080_v17  ;;  %2662 = vmatpush3.bf16.msra.mxu1 %v2824_v10  ;;  %v1433_v10 = vld [vmem:[#allocation7 + $0x48] sm:$0xff] }
  0xa2   : > { %2644 = vmatpush3.bf16.msra.mxu0 %v2817_v18  ;;  %v1484_v18 = vld [vmem:[#allocation7 + $0x1e0] sm:$0xff] }
  0xa3   : > { %2645 = vmatprep.subr.bf16.mxu0 %v3080_v17 }
  0xa6   : > { %2646 = vmatpush3.bf16.msra.mxu0 %v2818_v19  ;;  %v1481_v19 = vld [vmem:[#allocation7 + $0x1c8] sm:$0xff] }
  0xa7   : > { %2647 = vmatprep.subr.bf16.mxu0 %v3080_v17 }
  0xaa   : > { %2648 = vmatpush3.bf16.msra.mxu0 %v2819_v20 }
  0xab   : > { %2649 = vmatprep.subr.bf16.mxu0 %v3080_v17 }
  0xae   : > { %2650 = vmatpush3.bf16.msra.mxu0 %v2820_v21  ;;  %v1485_v21 = vld [vmem:[#allocation7 + $0x1e8] sm:$0xff] }
  0xaf   : > { %2651 = vmatprep.subr.bf16.mxu0 %v3080_v17 }
  0xb2   : > { %2652 = vmatpush3.bf16.msra.mxu0 %v2821_v22  ;;  %v2506_v22 = vcombine.low %v1481_v19, %v1485_v21 }
  0xb3   : > { %2653 = vmatprep.subr.bf16.mxu0 %v3080_v17 }
  0xb6   : > { %2654 = vmatpush3.bf16.msra.mxu0 %v2822_v23  ;;  %v2507_v23 = vcombine.high %v1481_v19, %v1485_v21 }
  0xb7   : > { %2655 = vmatprep.subr.bf16.mxu0 %v3080_v17  ;;  %v1480_v17 = vld [vmem:[#allocation7 + $0x1c0] sm:$0xff] }
  0xb8   : > { %v2505_v20 = vcombine.high %v1480_v17, %v1484_v18 }
  0xba   : > { %2656 = vmatpush3.bf16.msra.mxu0 %v2823_v24  ;;  %v1473_v24 = vld [vmem:[#allocation7 + $0x188] sm:$0xff]  ;;  %1850 = vmatprep.subr.bf16.mxu1 %v2505_v20 }
  0xbb   : > { %v2499_v26 = vcombine.high %v1473_v24, %v1477_v25  ;;  %1893 = vmatprep.subr.bf16.mxu0 %v2507_v23  ;;  %v1429_v20 = vld [vmem:[#allocation7 + $0x28] sm:$0xff] }
  0xea   : > { %v1329_v11 = vpop.permute.xlu0 %1328 }
  0xee   : > { %v1331_v14 = vpop.permute.xlu0 %1330 }
 0x13d   : > { %v2558_v27 = vpop.f32.mrf.mxu0 }
 0x13e   : > { %v2580_v28 = vpop.f32.mrf.mxu1 }
 0x13f   : > { %v2559_v29 = vpop.f32.mrf.mxu0 }
 0x140   : > { %v2581_v30 = vpop.f32.mrf.mxu1  ;;  %v2560_v32 = vadd.f32 %v2559_v29, %v2558_v27  ;;  %v1465_v27 = vld [vmem:[#allocation7 + $0x148] sm:$0xff] }
 0x141   : > { %v2561_v31 = vpop.f32.mrf.mxu0  ;;  %v2582_v37 = vadd.f32 %v2581_v30, %v2580_v28  ;;  %v1469_v28 = vld [vmem:[#allocation7 + $0x168] sm:$0xff]  ;;  %v2498_v30 = vcombine.low %v1473_v24, %v1477_v25  ;;  %v1482_v24 = vld [vmem:[#allocation7 + $0x1d0] sm:$0xff] }
 0x142   : > { %v2583_v33 = vpop.f32.mrf.mxu1  ;;  %v1074_v36 = vadd.f32 %v2560_v32, %v2363_v34  ;;  %v2491_v32 = vcombine.high %v1465_v27, %v1469_v28  ;;  %v1486_v25 = vld [vmem:[#allocation7 + $0x1f0] sm:$0xff] }
 0x143   : > { %v2562_v35 = vpop.f32.mrf.mxu0 }
 0x144   : > { %v2563_v38 = vadd.f32 %v2562_v35, %v2561_v31  ;;  %v2584_v39 = vpop.f32.mrf.mxu1  ;;  %v1115_v43 = vadd.f32 %v2582_v37, %v1074_v36  ;;  %v1472_v36 = vld [vmem:[#allocation7 + $0x180] sm:$0xff] }
 0x145   : > { %v2585_v48 = vadd.f32 %v2584_v39, %v2583_v33  ;;  %v1457_v33 = vld [vmem:[#allocation7 + $0x108] sm:$0xff]  ;;  %v1476_v37 = vld [vmem:[#allocation7 + $0x1a0] sm:$0xff] }
 0x146   : > { %v1077_v44 = vadd.f32 %v2563_v38, %v2363_v34  ;;  %v1461_v34 = vld [vmem:[#allocation7 + $0x128] sm:$0xff]  ;;  %v2490_v38 = vcombine.low %v1465_v27, %v1469_v28  ;;  %v2508_v27 = vcombine.low %v1482_v24, %v1486_v25  ;;  %v2509_v28 = vcombine.high %v1482_v24, %v1486_v25  ;;  %v1439_v24 = vld [vmem:[#allocation7 + $0x78] sm:$0xff] }
 0x148   : > { %v1118_v52 = vadd.f32 %v2585_v48, %v1077_v44  ;;  %v2482_v48 = vcombine.low %v1457_v33, %v1461_v34 }
 0x15d   : > { %v2602_v40 = vpop.f32.mrf.mxu0 }
 0x15e   : > { %v2624_v41 = vpop.f32.mrf.mxu1 }
 0x15f   : > { %v2603_v42 = vpop.f32.mrf.mxu0 }
 0x160   : > { %v2604_v45 = vadd.f32 %v2603_v42, %v2602_v40  ;;  %v2625_v46 = vpop.f32.mrf.mxu1  ;;  %v2483_v40 = vcombine.high %v1457_v33, %v1461_v34  ;;  %v1449_v42 = vld [vmem:[#allocation7 + $0xc8] sm:$0xff] }
 0x161   : > { %v2605_v47 = vpop.f32.mrf.mxu0  ;;  %v2626_v53 = vadd.f32 %v2625_v46, %v2624_v41  ;;  %v2504_v41 = vcombine.low %v1480_v17, %v1484_v18  ;;  %v1464_v46 = vld [vmem:[#allocation7 + $0x140] sm:$0xff]  ;;  %v1425_v18 = vld [vmem:[#allocation7 + $0x8] sm:$0xff] }
 0x162   : > { %v1156_v49 = vadd.f32 %v2604_v45, %v1115_v43  ;;  %v2627_v50 = vpop.f32.mrf.mxu1  ;;  %v1453_v43 = vld [vmem:[#allocation7 + $0xe8] sm:$0xff]  ;;  %v2497_v45 = vcombine.high %v1472_v36, %v1476_v37  ;;  %v1428_v17 = vld [vmem:[#allocation7 + $0x20] sm:$0xff]  ;;  %v2451_v23 = vcombine.high %v1425_v18, %v1429_v20 }
 0x163   : > { %v2606_v51 = vpop.f32.mrf.mxu0 }
 0x164   : > { %v2607_v54 = vadd.f32 %v2606_v51, %v2605_v47  ;;  %v2628_v55 = vpop.f32.mrf.mxu1  ;;  %v1197_v56 = vadd.f32 %v2626_v53, %v1156_v49  ;;  %v1468_v47 = vld [vmem:[#allocation7 + $0x160] sm:$0xff]  ;;  %v2475_v49 = vcombine.high %v1449_v42, %v1453_v43  ;;  %v1441_v51 = vld [vmem:[#allocation7 + $0x88] sm:$0xff] }
 0x165   : > { %v2629_v58 = vadd.f32 %v2628_v55, %v2627_v50  ;;  %v2496_v50 = vcombine.low %v1472_v36, %v1476_v37  ;;  %v2489_v53 = vcombine.high %v1464_v46, %v1468_v47  ;;  %v1460_v55 = vld [vmem:[#allocation7 + $0x120] sm:$0xff] }
 0x166   : > { %v1159_v57 = vadd.f32 %v2607_v54, %v1118_v52  ;;  %v1203_v60 = vmax.f32 %v1197_v56, 0.0  ;;  %v1445_v52 = vld [vmem:[#allocation7 + $0xa8] sm:$0xff]  ;;  %v1456_v54 = vld [vmem:[#allocation7 + $0x100] sm:$0xff]  ;;  %v2474_v56 = vcombine.low %v1449_v42, %v1453_v43  ;;  %v1474_v43 = vld [vmem:[#allocation7 + $0x190] sm:$0xff] }
 0x167   : > { %v2445_v37 = vld [vmem:[%s3495_s6] ss:$0 sm:$0xff] }
 0x168   : > { %v1200_v59 = vadd.f32 %v2629_v58, %v1159_v57  ;;  %v2467_v57 = vcombine.high %v1441_v51, %v1445_v52  ;;  %v2488_v58 = vcombine.low %v1464_v46, %v1468_v47  ;;  %v1479_v46 = vld [vmem:[#allocation7 + $0x1b8] sm:$0xff] }
 0x16a   : > { %v1204_v61 = vmax.f32 %v1200_v59, 0.0  ;;  %v2481_v59 = vcombine.high %v1456_v54, %v1460_v55 }
 0x16c   : > { %v1205_v62 = vpack.c.bf16 %v1204_v61, %v1203_v60  ;;  %v1448_v60 = vld [vmem:[#allocation7 + $0xc0] sm:$0xff] }
 0x16d   : > { %v1452_v61 = vld [vmem:[#allocation7 + $0xe0] sm:$0xff] }
 0x16e   : > { %2658 = vmatmul.mubr.bf16.vlgmr.msra.gmra.mxu0 %v1205_v62  ;;  %v2466_v62 = vcombine.low %v1441_v51, %v1445_v52  ;;  %v1466_v51 = vld [vmem:[#allocation7 + $0x150] sm:$0xff] }
 0x16f   : > { %1894 = vmatpush1.bf16.msra.mxu0 %v2506_v22  ;;  %v2450_v22 = vcombine.low %v1425_v18, %v1429_v20  ;;  %v1470_v52 = vld [vmem:[#allocation7 + $0x170] sm:$0xff] }
 0x170   : > { %1895 = vmatprep.subr.bf16.mxu0 %v2499_v26  ;;  %v1483_v26 = vld [vmem:[#allocation7 + $0x1d8] sm:$0xff] }
 0x173   : > { %1896 = vmatpush1.bf16.msra.mxu0 %v2498_v30  ;;  %v3085_v30 = vmov 0  }
 0x174   : > { %1897 = vmatprep.subr.bf16.mxu0 %v2491_v32  ;;  %1925 = vmatprep.mubr.bf16.mxu0 %v3085_v30 }
 0x177   : > { %1898 = vmatpush1.bf16.msra.mxu0 %v2490_v38 }
 0x178   : > { %1899 = vmatprep.subr.bf16.mxu0 %v2483_v40 }
 0x17b   : > { %1900 = vmatpush1.bf16.msra.mxu0 %v2482_v48 }
 0x17c   : > { %1901 = vmatprep.subr.bf16.mxu0 %v2475_v49 }
 0x17f   : > { %1902 = vmatpush1.bf16.msra.mxu0 %v2474_v56 }
 0x180   : > { %1903 = vmatprep.subr.bf16.mxu0 %v2467_v57  ;;  %v2493_v57 = vcombine.high %v1466_v51, %v1470_v52 }
 0x183   : > { %1904 = vmatpush1.bf16.msra.mxu0 %v2466_v62  ;;  %v1463_v62 = vld [vmem:[#allocation7 + $0x138] sm:$0xff] }
 0x22e   : > { %v1311_v0 = vpop.f32.mrf.mxu0 }
 0x22f   : > { %v3342_v1 = vadd.f32 %v2436_v63, %v1311_v0  ;;  %v2473_v0 = vcombine.high %v1448_v60, %v1452_v61 }
 0x230   : > { %v2659_v2 = vpop.f32.mrf.mxu0 }
 0x231   : > { %v1318_v3 = vmul.f32 0.5, %v3342_v1  ;;  %v1440_v2 = vld [vmem:[#allocation7 + $0x80] sm:$0xff] }
 0x232   : > { %v1314_v4 = vpop.f32.mrf.mxu0 }
 0x233   : > { %v1320_v5 = vmul.f32 1.442695, %v1318_v3  ;;  %v3345_v6 = vadd.f32 %v2436_v63, %v1314_v4  ;;  %v2480_v63 = vcombine.low %v1456_v54, %v1460_v55  ;;  %v1444_v3 = vld [vmem:[#allocation7 + $0xa0] sm:$0xff]  ;;  %v2472_v4 = vcombine.low %v1448_v60, %v1452_v61  ;;  %v1471_v54 = vld [vmem:[#allocation7 + $0x178] sm:$0xff]  ;;  %v1462_v60 = vld [vmem:[#allocation7 + $0x130] sm:$0xff] }
 0x234   : > { %v2660_v7 = vpop.f32.mrf.mxu0  ;;  %v1459_v61 = vld [vmem:[#allocation7 + $0x118] sm:$0xff] }
 0x235   : > { %2825 = vpow2.f32 %v1320_v5  ;;  %v1319_v8 = vmul.f32 0.5, %v3345_v6  ;;  %v2465_v5 = vcombine.high %v1440_v2, %v1444_v3  ;;  %v2464_v7 = vcombine.low %v1440_v2, %v1444_v3 }
 0x236   : > { %v2487_v3 = vcombine.high %v1459_v61, %v1463_v62 }
 0x237   : > { %v1322_v9 = vmul.f32 1.442695, %v1319_v8  ;;  %v1432_v8 = vld [vmem:[#allocation7 + $0x40] sm:$0xff] }
 0x239   : > { %2827 = vpow2.f32 %v1322_v9  ;;  %v1436_v9 = vld [vmem:[#allocation7 + $0x60] sm:$0xff] }
 0x242   : > { %v2826_v12 = vpop.eup %2825 }
 0x243   : > { %v1334_v13 = vmul.f32 %v2826_v12, %v1329_v11  ;;  %v2457_v11 = vcombine.high %v1432_v8, %v1436_v9  ;;  %v1437_v12 = vld [vmem:[#allocation7 + $0x68] sm:$0xff] }
 0x245   : > { %1338 = vrot.lane.b32.xlu1 %v1334_v13, %s3083_s25  ;;  %v2456_v13 = vcombine.low %v1432_v8, %v1436_v9  ;;  %v1455_v8 = vld [vmem:[#allocation7 + $0xf8] sm:$0xff] }
 0x246   : > { %v2828_v15 = vpop.eup %2827 }
 0x247   : > { %v1335_v16 = vmul.f32 %v2828_v15, %v1331_v14  ;;  %v2458_v14 = vcombine.low %v1433_v10, %v1437_v12  ;;  %v2459_v15 = vcombine.high %v1433_v10, %v1437_v12  ;;  %v2486_v10 = vcombine.low %v1459_v61, %v1463_v62 }
 0x249   : > { %1340 = vrot.lane.b32.xlu1 %v1335_v16, %s3083_s25  ;;  %1905 = vmatprep.subr.bf16.mxu0 %v2459_v15  ;;  %v1424_v16 = vld [vmem:[#allocation7] sm:$0xff]  ;;  %v1443_v15 = vld [vmem:[#allocation7 + $0x98] sm:$0xff]  ;;  %s3086_s25 = smov [#allocation9]  }
 0x24a   : > { %1906 = vmatpush1.bf16.msra.mxu0 %v2458_v14  ;;  %v2449_v19 = vcombine.high %v1424_v16, %v1428_v17  ;;  %v2448_v21 = vcombine.low %v1424_v16, %v1428_v17  ;;  %v1446_v14 = vld [vmem:[#allocation7 + $0xb0] sm:$0xff]  ;;  %v1447_v16 = vld [vmem:[#allocation7 + $0xb8] sm:$0xff]  ;;  %s2977_s15 = sshll.u32 %s3086_s25, 4  ;;  %s2978_s15 = int_to_ptr.vmem [resolvable:$false] %s2977_s15 }
 0x24b   : > { %1907 = vmatprep.subr.bf16.mxu0 %v2451_v23  ;;  %v2471_v20 = vcombine.high %v1443_v15, %v1447_v16  ;;  %v1435_v23 = vld [vmem:[#allocation7 + $0x58] sm:$0xff]  ;;  %p2980_p12 = scmp.lt.s32.totalorder %s3372_s26, %s2978_s15 }
 0x24e   : > { %1908 = vmatpush1.bf16.msra.mxu0 %v2450_v22  ;;  %v1438_v22 = vld [vmem:[#allocation7 + $0x70] sm:$0xff] }
 0x2b7   : > { %v1339_v29 = vpop.permute.xlu1 %1338 }
 0x2b8   : > { %v1344_v31 = vadd.f32 %v1339_v29, %v3342_v1  ;;  %v1487_v29 = vld [vmem:[#allocation7 + $0x1f8] sm:$0xff] }
 0x2b9   : > { %v2511_v32 = vcombine.high %v1483_v26, %v1487_v29 }
 0x2ba   : > { %1348 = vrot.lane.b32.xlu0 %v1344_v31, %s3084_s27 }
 0x2bb   : > { %v1341_v35 = vpop.permute.xlu1 %1340  ;;  %1979 = vmatprep.subr.bf16.mxu0 %v2511_v32  ;;  %v1431_v32 = vld [vmem:[#allocation7 + $0x38] sm:$0xff] }
 0x2bc   : > { %v1345_v39 = vadd.f32 %v1341_v35, %v3345_v6 }
 0x2be   : > { %v1360_v44 = vpack.c.bf16 %v1345_v39, %v1344_v31  ;;  %1350 = vrot.lane.b32.xlu1 %v1345_v39, %s3084_s27  ;;  %v2510_v31 = vcombine.low %v1483_v26, %v1487_v29  ;;  %v2470_v26 = vcombine.low %v1443_v15, %v1447_v16  ;;  %v1426_v29 = vld [vmem:[#allocation7 + $0x10] sm:$0xff] }
 0x2c0   : > { %2664 = vmatmul.mubr.msk.bf16.vlgmr.msra.gmra.mxu1 %vm1376_vm1, %v1360_v44  ;;  %v1478_v44 = vld [vmem:[#allocation7 + $0x1b0] sm:$0xff] }
 0x2c1   : > { %1851 = vmatpush1.bf16.msra.mxu1 %v2504_v41  ;;  %1882 = vmatprep.mubr.bf16.mxu1 %v3085_v30  ;;  %v2500_v55 = vcombine.low %v1474_v43, %v1478_v44 }
 0x2c2   : > { %1852 = vmatprep.subr.bf16.mxu1 %v2497_v45  ;;  %v1475_v45 = vld [vmem:[#allocation7 + $0x198] sm:$0xff] }
 0x2c3   : > { %v2502_v56 = vcombine.low %v1475_v45, %v1479_v46 }
 0x2c5   : > { %1853 = vmatpush1.bf16.msra.mxu1 %v2496_v50  ;;  %v2503_v50 = vcombine.high %v1475_v45, %v1479_v46 }
 0x2c6   : > { %1854 = vmatprep.subr.bf16.mxu1 %v2489_v53  ;;  %v1467_v53 = vld [vmem:[#allocation7 + $0x158] sm:$0xff] }
 0x2c9   : > { %1855 = vmatpush1.bf16.msra.mxu1 %v2488_v58  ;;  %v2495_v58 = vcombine.high %v1467_v53, %v1471_v54 }
 0x2ca   : > { %1856 = vmatprep.subr.bf16.mxu1 %v2481_v59  ;;  %v1458_v59 = vld [vmem:[#allocation7 + $0x110] sm:$0xff] }
 0x2cb   : > { %v2485_v2 = vcombine.high %v1458_v59, %v1462_v60  ;;  %v2484_v9 = vcombine.low %v1458_v59, %v1462_v60 }
 0x2cd   : > { %1857 = vmatpush1.bf16.msra.mxu1 %v2480_v63  ;;  %v2492_v63 = vcombine.low %v1466_v51, %v1470_v52 }
 0x2ce   : > { %1858 = vmatprep.subr.bf16.mxu1 %v2473_v0  ;;  %v2494_v0 = vcombine.low %v1467_v53, %v1471_v54 }
 0x2d1   : > { %1859 = vmatpush1.bf16.msra.mxu1 %v2472_v4  ;;  %v1450_v4 = vld [vmem:[#allocation7 + $0xd0] sm:$0xff] }
 0x2d2   : > { %1860 = vmatprep.subr.bf16.mxu1 %v2465_v5  ;;  %v1454_v5 = vld [vmem:[#allocation7 + $0xf0] sm:$0xff] }
 0x2d3   : > { %v2476_v17 = vcombine.low %v1450_v4, %v1454_v5 }
 0x2d5   : > { %1861 = vmatpush1.bf16.msra.mxu1 %v2464_v7  ;;  %v1451_v7 = vld [vmem:[#allocation7 + $0xd8] sm:$0xff] }
 0x2d6   : > { %1862 = vmatprep.subr.bf16.mxu1 %v2457_v11  ;;  %v2477_v11 = vcombine.high %v1450_v4, %v1454_v5  ;;  %v2479_v12 = vcombine.high %v1451_v7, %v1455_v8  ;;  %v2478_v18 = vcombine.low %v1451_v7, %v1455_v8 }
 0x2d9   : > { %1863 = vmatpush1.bf16.msra.mxu1 %v2456_v13  ;;  %v1442_v13 = vld [vmem:[#allocation7 + $0x90] sm:$0xff] }
 0x2da   : > { %1864 = vmatprep.subr.bf16.mxu1 %v2449_v19  ;;  %v2469_v19 = vcombine.high %v1442_v13, %v1446_v14  ;;  %v2468_v25 = vcombine.low %v1442_v13, %v1446_v14 }
 0x2dd   : > { %1865 = vmatpush1.bf16.msra.mxu1 %v2448_v21  ;;  %v1434_v21 = vld [vmem:[#allocation7 + $0x50] sm:$0xff] }
 0x2de   : > { %1936 = vmatprep.subr.bf16.mxu1 %v2509_v28  ;;  %v2463_v28 = vcombine.high %v1435_v23, %v1439_v24 }
 0x32c   : > { %v1349_v33 = vpop.permute.xlu0 %1348 }
 0x32d   : > { %v1355_v34 = vsel %vm1354_vm2, %v3342_v1, %v1349_v33  ;;  %v2460_v33 = vcombine.low %v1434_v21, %v1438_v22 }
 0x32e   : > { %1358 = vst.msk [vmem:[%s3357_s12] sm:$0xff] %vm1357_vm3, %v1355_v34  ;;  %v2462_v34 = vcombine.low %v1435_v23, %v1439_v24 }
 0x330   : > { %v1351_v35 = vpop.permute.xlu1 %1350 }
 0x331   : > { %v1356_v36 = vsel %vm1354_vm2, %v3345_v6, %v1351_v35  ;;  %v2501_v6 = vcombine.high %v1474_v43, %v1478_v44 }
 0x332   : > { %1359 = vst.msk [vmem:[%s3357_s12 + $0x8] sm:$0xff] %vm1357_vm3, %v1356_v36  ;;  %s2979_s12 = scalar_lea.vmem %s2978_s15, 512 }
 0x333   : > { %p2981_p3 = scmp.lt.s32.totalorder %s2979_s12, %s2973_s23 }
 0x335   : > { %p2982_p9 = por %p2981_p3, %p2980_p12 }
 0x337   : > { %p2983_p13 = pnand %p2982_p9, %p2976_p6 }
 0x380   : > { %v1414_v38 = vpop.f32.mrf.mxu1 }
 0x381   : > { %v1415_v40 = vadd.f32 %v2445_v37, %v1414_v38 }
 0x382   : > { %v2665_v39 = vpop.f32.mrf.mxu1 }
 0x383   : > { %v1421_v47 = vmax.f32 %v1415_v40, 0.0 }
 0x384   : > { %v1417_v41 = vpop.f32.mrf.mxu1 }
 0x385   : > { %v1418_v42 = vadd.f32 %v2445_v37, %v1417_v41 }
 0x386   : > { %v2666_v1 = vpop.f32.mrf.mxu1 }
 0x387   : > { %v1422_v48 = vmax.f32 %v1418_v42, 0.0 }
 0x389   : > { %v3365_v49 = vpack.c.bf16 %v1422_v48, %v1421_v47 }
 0x38b   : > { %1883 = vmatmul.mubr.bf16.vlgmr.msra.gmra.mxu1 %v3365_v49  ;;  %1926 = vmatmul.mubr.bf16.vlgmr.msra.gmra.mxu0 %v3365_v49 }
 0x38c   : > { %1937 = vmatpush1.bf16.msra.mxu1 %v2508_v27  ;;  %1980 = vmatpush1.bf16.msra.mxu0 %v2510_v31  ;;  %v2461_v27 = vcombine.high %v1434_v21, %v1438_v22  ;;  %v1427_v31 = vld [vmem:[#allocation7 + $0x18] sm:$0xff] }
 0x38d   : > { %1938 = vmatprep.subr.bf16.mxu1 %v2501_v6  ;;  %1981 = vmatprep.subr.bf16.mxu0 %v2503_v50  ;;  %v2455_v36 = vcombine.high %v1427_v31, %v1431_v32  ;;  %v2454_v38 = vcombine.low %v1427_v31, %v1431_v32 }
 0x38e   : > { %1968 = vmatprep.mubr.bf16.mxu1 %v3085_v30  ;;  %2011 = vmatprep.mubr.bf16.mxu0 %v3085_v30  ;;  %v1430_v30 = vld [vmem:[#allocation7 + $0x30] sm:$0xff] }
 0x38f   : > { %v2453_v35 = vcombine.high %v1426_v29, %v1430_v30  ;;  %v2452_v37 = vcombine.low %v1426_v29, %v1430_v30 }
 0x390   : > { %1939 = vmatpush1.bf16.msra.mxu1 %v2500_v55  ;;  %1982 = vmatpush1.bf16.msra.mxu0 %v2502_v56 }
 0x391   : > { %1940 = vmatprep.subr.bf16.mxu1 %v2493_v57  ;;  %1983 = vmatprep.subr.bf16.mxu0 %v2495_v58 }
 0x394   : > { %1941 = vmatpush1.bf16.msra.mxu1 %v2492_v63  ;;  %1984 = vmatpush1.bf16.msra.mxu0 %v2494_v0 }
 0x395   : > { %1942 = vmatprep.subr.bf16.mxu1 %v2485_v2  ;;  %1985 = vmatprep.subr.bf16.mxu0 %v2487_v3 }
 0x398   : > { %1943 = vmatpush1.bf16.msra.mxu1 %v2484_v9  ;;  %1986 = vmatpush1.bf16.msra.mxu0 %v2486_v10 }
 0x399   : > { %1944 = vmatprep.subr.bf16.mxu1 %v2477_v11  ;;  %1987 = vmatprep.subr.bf16.mxu0 %v2479_v12 }
 0x39c   : > { %1945 = vmatpush1.bf16.msra.mxu1 %v2476_v17  ;;  %1988 = vmatpush1.bf16.msra.mxu0 %v2478_v18 }
 0x39d   : > { %1946 = vmatprep.subr.bf16.mxu1 %v2469_v19  ;;  %1989 = vmatprep.subr.bf16.mxu0 %v2471_v20 }
 0x3a0   : > { %1947 = vmatpush1.bf16.msra.mxu1 %v2468_v25  ;;  %1990 = vmatpush1.bf16.msra.mxu0 %v2470_v26 }
 0x3a1   : > { %1948 = vmatprep.subr.bf16.mxu1 %v2461_v27  ;;  %1991 = vmatprep.subr.bf16.mxu0 %v2463_v28 }
 0x3a4   : > { %1949 = vmatpush1.bf16.msra.mxu1 %v2460_v33  ;;  %1992 = vmatpush1.bf16.msra.mxu0 %v2462_v34 }
 0x3a5   : > { %1950 = vmatprep.subr.bf16.mxu1 %v2453_v35  ;;  %1993 = vmatprep.subr.bf16.mxu0 %v2455_v36 }
 0x3a8   : > { %1951 = vmatpush1.bf16.msra.mxu1 %v2452_v37  ;;  %1994 = vmatpush1.bf16.msra.mxu0 %v2454_v38 }
 0x3ab   : > { %1969 = vmatmul.mubr.bf16.vlgmr.msra.gmra.mxu1 %v3365_v49  ;;  %2012 = vmatmul.mubr.bf16.vlgmr.msra.gmra.mxu0 %v3365_v49 }
 0x3ac   : > { %2986 = shalt.err (!%p2983_p13)
}
 0x3ad   : > { %s2987_s14 = scalar_lea.hbm %s3378_s1, 256  ;;  %s2991_s30 = scalar_lea.hbm %s3500_s11, 512 }
 0x3ae   : > { %p2988_p5 = scmp.ne.s32.totalorder %s3378_s1, %s2987_s14  ;;  %p2992_p8 = scmp.lt.s32.totalorder %s3378_s1, %s3500_s11 }
 0x3af   : > { %p2993_p7 = scmp.lt.s32.totalorder %s2991_s30, %s2987_s14 }
 0x3b0   : > { %p2989_p0 = pnand %p2988_p5, %p3530_p1 }
 0x3b1   : > { %p2994_p11 = por %p2993_p7, %p2992_p8 }
 0x3b2   : > { %p2990_p4 = pneg %p2989_p0 }
 0x3b4   : > { %p2995_p10 = pnand %p2994_p11, %p2990_p4 }
 0x3b6   : > { %2998 = shalt.err (!%p2995_p10)
}
 0x3b7   : > { %s3087_s23 = smov 128   ;;  %s3088_s15 = smov 8   ;;  %v1490_v39 = vlaneseq  ;;  %v3410_v43 = vld [vmem:[%s3497_s8] sm:$0xff] }
 0x3b8   : > { %2678 = dma.vmem_to_hbm [thread:$0]  (%p3530_p1), %s3372_s26, 256, %s3378_s1, %s2180_s7, %s3087_s23, %s3087_s23, %s3088_s15  }
 0x3b9   : > { %v3403_v40 = vshrl.u32 %v1490_v39, 7  ;;  %s3428_s26 = scalar_lea.vmem [#allocation8], %s2356_s13  ;;  %s2540_s13 = sshll.u32 %s3172_s21, 10 }
 0x3ba   : > { %s2194_s1 = sshll.u32 %s3428_s26, 4  ;;  %s3442_s16 = scalar_lea.hbm %s3499_s10, %s2540_s13  ;;  %s3444_s1 = int_to_ptr.vmem [resolvable:$true] %s2194_s1 }
 0x3bb   : > { %v1492_v41 = vsub.s32 0, %v3403_v40  ;;  %v1500_v42 = vsub.s32 2, %v3403_v40  ;;  %v1496_v1 = vsub.s32 1, %v3403_v40  ;;  %v1504_v44 = vsub.s32 3, %v3403_v40  ;;  %s2175_s30 = scalar_lea.sflag [#allocation4], %s3284_s19  ;;  %s2999_s21 = scalar_lea.vmem %s3444_s1, 1024 }
 0x3bc   : > { %v1508_v27 = vsub.s32 4, %v3403_v40  ;;  %v1516_v28 = vsub.s32 6, %v3403_v40  ;;  %v1512_v33 = vsub.s32 5, %v3403_v40  ;;  %v1520_v34 = vsub.s32 7, %v3403_v40  ;;  %p3000_p2 = scmp.ne.s32.totalorder %s3444_s1, %s2999_s21  ;;  %s3089_s29 = smov [#allocation8]  }
 0x3bd   : > { %v1493_v45 = vrot.slane %v3410_v43, %v1492_v41  ;;  %v1501_v46 = vrot.slane %v3410_v43, %v1500_v42  ;;  %v1497_v47 = vrot.slane %v3410_v43, %v1496_v1  ;;  %v1505_v48 = vrot.slane %v3410_v43, %v1504_v44  ;;  %s3003_s25 = sshll.u32 %s3089_s29, 4  ;;  %s3004_s25 = int_to_ptr.vmem [resolvable:$false] %s3003_s25 }
 0x3be   : > { %v1509_v38 = vrot.slane %v3410_v43, %v1508_v27  ;;  %v1517_v39 = vrot.slane %v3410_v43, %v1516_v28  ;;  %v1513_v41 = vrot.slane %v3410_v43, %v1512_v33  ;;  %v1521_v42 = vrot.slane %v3410_v43, %v1520_v34  ;;  %p3001_p6 = pnand %p3000_p2, %p3530_p1  ;;  %s3005_s23 = scalar_lea.vmem %s3004_s25, 2048 }
 0x3bf   : > { %p3006_p3 = scmp.lt.s32.totalorder %s3444_s1, %s3004_s25  ;;  %p3007_p9 = scmp.lt.s32.totalorder %s3005_s23, %s2999_s21 }
 0x3c0   : > { %p3002_p12 = pneg %p3001_p6 }
 0x3c1   : > { %p3008_p13 = por %p3007_p9, %p3006_p3 }
 0x3c3   : > { %p3009_p5 = pnand %p3008_p13, %p3002_p12 }
 0x44b   : > { %v1884_v49 = vpop.f32.mrf.mxu1  ;;  %v1927_v6 = vpop.f32.mrf.mxu0 }
 0x44c   : > { %v1885_v50 = vadd.f32 %v1884_v49, %v1493_v45  ;;  %v1928_v51 = vadd.f32 %v1927_v6, %v1501_v46 }
 0x44d   : > { %v1886_v52 = vpop.f32.mrf.mxu1  ;;  %v1929_v53 = vpop.f32.mrf.mxu0 }
 0x44e   : > { %v2022_v54 = vsub.f32 0.0, %v1885_v50  ;;  %v2024_v55 = vsub.f32 0.0, %v1928_v51  ;;  %v1887_v56 = vadd.f32 %v1886_v52, %v1497_v47  ;;  %v1930_v57 = vadd.f32 %v1929_v53, %v1505_v48 }
 0x44f   : > { %v1888_v58 = vpop.f32.mrf.mxu1  ;;  %v1931_v59 = vpop.f32.mrf.mxu0 }
 0x450   : > { %v2038_v60 = vmul.f32 1.442695, %v2022_v54  ;;  %v2042_v61 = vmul.f32 1.442695, %v2024_v55  ;;  %v2023_v62 = vsub.f32 0.0, %v1887_v56  ;;  %v2025_v63 = vsub.f32 0.0, %v1930_v57 }
 0x451   : > { %v1889_v0 = vadd.f32 %v1888_v58, %v1493_v45  ;;  %v1932_v2 = vadd.f32 %v1931_v59, %v1501_v46  ;;  %v1890_v3 = vpop.f32.mrf.mxu1  ;;  %v1933_v4 = vpop.f32.mrf.mxu0 }
 0x452   : > { %2829 = vpow2.f32 %v2038_v60  ;;  %v2040_v5 = vmul.f32 1.442695, %v2023_v62  ;;  %v2044_v7 = vmul.f32 1.442695, %v2025_v63  ;;  %v1891_v8 = vadd.f32 %v1890_v3, %v1497_v47 }
 0x453   : > { %2831 = vpow2.f32 %v2042_v61  ;;  %v2030_v9 = vsub.f32 0.0, %v1889_v0  ;;  %v2032_v10 = vsub.f32 0.0, %v1932_v2  ;;  %v1934_v11 = vadd.f32 %v1933_v4, %v1505_v48 }
 0x454   : > { %2833 = vpow2.f32 %v2040_v5  ;;  %v2031_v12 = vsub.f32 0.0, %v1891_v8 }
 0x455   : > { %2835 = vpow2.f32 %v2044_v7  ;;  %v2054_v13 = vmul.f32 1.442695, %v2030_v9  ;;  %v2058_v14 = vmul.f32 1.442695, %v2032_v10  ;;  %v2033_v15 = vsub.f32 0.0, %v1934_v11 }
 0x456   : > { %v2056_v16 = vmul.f32 1.442695, %v2031_v12 }
 0x457   : > { %2837 = vpow2.f32 %v2054_v13  ;;  %v2060_v17 = vmul.f32 1.442695, %v2033_v15 }
 0x458   : > { %2839 = vpow2.f32 %v2058_v14 }
 0x459   : > { %2841 = vpow2.f32 %v2056_v16 }
 0x45a   : > { %2843 = vpow2.f32 %v2060_v17 }
 0x45f   : > { %v2830_v18 = vpop.eup %2829 }
 0x460   : > { %v2832_v19 = vpop.eup %2831  ;;  %v2070_v20 = vadd.f32 1.0, %v2830_v18 }
 0x461   : > { %v2834_v21 = vpop.eup %2833  ;;  %v2072_v22 = vadd.f32 1.0, %v2832_v19 }
 0x462   : > { %v2836_v23 = vpop.eup %2835  ;;  %2845 = vrcp.f32 %v2070_v20  ;;  %v2071_v24 = vadd.f32 1.0, %v2834_v21 }
 0x463   : > { %2847 = vrcp.f32 %v2072_v22  ;;  %v2073_v25 = vadd.f32 1.0, %v2836_v23 }
 0x464   : > { %v2838_v26 = vpop.eup %2837  ;;  %2849 = vrcp.f32 %v2071_v24 }
 0x465   : > { %v2840_v29 = vpop.eup %2839  ;;  %2851 = vrcp.f32 %v2073_v25  ;;  %v2078_v30 = vadd.f32 1.0, %v2838_v26 }
 0x466   : > { %v2842_v31 = vpop.eup %2841  ;;  %v2080_v32 = vadd.f32 1.0, %v2840_v29 }
 0x467   : > { %v2844_v35 = vpop.eup %2843  ;;  %2853 = vrcp.f32 %v2078_v30  ;;  %v2079_v36 = vadd.f32 1.0, %v2842_v31 }
 0x468   : > { %2855 = vrcp.f32 %v2080_v32  ;;  %v2081_v37 = vadd.f32 1.0, %v2844_v35 }
 0x469   : > { %2857 = vrcp.f32 %v2079_v36 }
 0x46a   : > { %2859 = vrcp.f32 %v2081_v37 }
 0x46b   : > { %v1970_v1 = vpop.f32.mrf.mxu1  ;;  %v2013_v44 = vpop.f32.mrf.mxu0 }
 0x46c   : > { %v1971_v45 = vadd.f32 %v1970_v1, %v1509_v38  ;;  %v2014_v46 = vadd.f32 %v2013_v44, %v1517_v39 }
 0x46d   : > { %v1972_v40 = vpop.f32.mrf.mxu1  ;;  %v2015_v47 = vpop.f32.mrf.mxu0 }
 0x46e   : > { %v2026_v48 = vsub.f32 0.0, %v1971_v45  ;;  %v2028_v49 = vsub.f32 0.0, %v2014_v46  ;;  %v1973_v6 = vadd.f32 %v1972_v40, %v1513_v41  ;;  %v2016_v50 = vadd.f32 %v2015_v47, %v1521_v42 }
 0x46f   : > { %v2846_v51 = vpop.eup %2845  ;;  %v1974_v52 = vpop.f32.mrf.mxu1 }
 0x470   : > { %v2017_v53 = vpop.f32.mrf.mxu0  ;;  %v2848_v54 = vpop.eup %2847  ;;  %v2102_v55 = vmin.f32 %v2846_v51, 1.0  ;;  %v2046_v56 = vmul.f32 1.442695, %v2026_v48  ;;  %v2050_v57 = vmul.f32 1.442695, %v2028_v49  ;;  %v2027_v58 = vsub.f32 0.0, %v1973_v6 }
 0x471   : > { %v2850_v59 = vpop.eup %2849  ;;  %v2104_v43 = vmin.f32 %v2848_v54, 1.0  ;;  %v2029_v60 = vsub.f32 0.0, %v2016_v50  ;;  %v1975_v61 = vadd.f32 %v1974_v52, %v1509_v38  ;;  %v2018_v62 = vadd.f32 %v2017_v53, %v1517_v39  ;;  %v1976_v63 = vpop.f32.mrf.mxu1 }
 0x472   : > { %v2852_v0 = vpop.eup %2851  ;;  %v2103_v2 = vmin.f32 %v2850_v59, 1.0  ;;  %2861 = vpow2.f32 %v2046_v56  ;;  %v2048_v3 = vmul.f32 1.442695, %v2027_v58  ;;  %v1977_v4 = vadd.f32 %v1976_v63, %v1513_v41  ;;  %v2019_v9 = vpop.f32.mrf.mxu0 }
 0x473   : > { %v2105_v5 = vmin.f32 %v2852_v0, 1.0  ;;  %2863 = vpow2.f32 %v2050_v57  ;;  %v2052_v7 = vmul.f32 1.442695, %v2029_v60  ;;  %v2034_v8 = vsub.f32 0.0, %v1975_v61 }
 0x474   : > { %v2854_v10 = vpop.eup %2853  ;;  %v2531_v11 = vpack.c.bf16 %v2103_v2, %v2102_v55  ;;  %2865 = vpow2.f32 %v2048_v3  ;;  %v2036_v12 = vsub.f32 0.0, %v2018_v62  ;;  %v2035_v13 = vsub.f32 0.0, %v1977_v4 }
 0x475   : > { %v2856_v14 = vpop.eup %2855  ;;  %v2532_v15 = vpack.c.bf16 %v2105_v5, %v2104_v43  ;;  %2867 = vpow2.f32 %v2052_v7  ;;  %v2062_v16 = vmul.f32 1.442695, %v2034_v8  ;;  %v2020_v20 = vadd.f32 %v2019_v9, %v1521_v42 }
 0x476   : > { %v2858_v17 = vpop.eup %2857  ;;  %2166 = vst [vmem:[%s3428_s26] sm:$0xff] %v2531_v11  ;;  %v2066_v18 = vmul.f32 1.442695, %v2036_v12  ;;  %v2064_v19 = vmul.f32 1.442695, %v2035_v13  ;;  %v2110_v22 = vmin.f32 %v2854_v10, 1.0  ;;  %v2112_v24 = vmin.f32 %v2856_v14, 1.0 }
 0x477   : > { %v2860_v21 = vpop.eup %2859  ;;  %2167 = vst [vmem:[%s3428_s26 + $0x8] sm:$0xff] %v2532_v15  ;;  %v2111_v23 = vmin.f32 %v2858_v17, 1.0  ;;  %2869 = vpow2.f32 %v2062_v16  ;;  %v2037_v26 = vsub.f32 0.0, %v2020_v20 }
 0x478   : > { %v2113_v25 = vmin.f32 %v2860_v21, 1.0  ;;  %2871 = vpow2.f32 %v2066_v18 }
 0x479   : > { %v2535_v27 = vpack.c.bf16 %v2111_v23, %v2110_v22  ;;  %2873 = vpow2.f32 %v2064_v19  ;;  %v2068_v29 = vmul.f32 1.442695, %v2037_v26 }
 0x47a   : > { %v2536_v28 = vpack.c.bf16 %v2113_v25, %v2112_v24 }
 0x47b   : > { %2170 = vst [vmem:[%s3428_s26 + $0x20] sm:$0xff] %v2535_v27  ;;  %2875 = vpow2.f32 %v2068_v29 }
 0x47c   : > { %2171 = vst [vmem:[%s3428_s26 + $0x28] sm:$0xff] %v2536_v28 }
 0x47f   : > { %v2862_v30 = vpop.eup %2861 }
 0x480   : > { %v2864_v31 = vpop.eup %2863  ;;  %v2074_v32 = vadd.f32 1.0, %v2862_v30 }
 0x481   : > { %v2866_v33 = vpop.eup %2865  ;;  %v2076_v34 = vadd.f32 1.0, %v2864_v31 }
 0x482   : > { %v2868_v35 = vpop.eup %2867  ;;  %2877 = vrcp.f32 %v2074_v32  ;;  %v2075_v36 = vadd.f32 1.0, %v2866_v33 }
 0x483   : > { %2879 = vrcp.f32 %v2076_v34  ;;  %v2077_v37 = vadd.f32 1.0, %v2868_v35 }
 0x484   : > { %v2870_v38 = vpop.eup %2869  ;;  %2881 = vrcp.f32 %v2075_v36 }
 0x485   : > { %v2872_v39 = vpop.eup %2871  ;;  %2883 = vrcp.f32 %v2077_v37  ;;  %v2082_v41 = vadd.f32 1.0, %v2870_v38 }
 0x486   : > { %v2874_v42 = vpop.eup %2873  ;;  %v2084_v1 = vadd.f32 1.0, %v2872_v39 }
 0x487   : > { %2885 = vrcp.f32 %v2082_v41  ;;  %v2083_v44 = vadd.f32 1.0, %v2874_v42 }
 0x488   : > { %v2876_v45 = vpop.eup %2875 }
 0x489   : > { %2887 = vrcp.f32 %v2083_v44  ;;  %v2085_v46 = vadd.f32 1.0, %v2876_v45 }
 0x48a   : > { %2889 = vrcp.f32 %v2084_v1 }
 0x48b   : > { %2891 = vrcp.f32 %v2085_v46 }
 0x48f   : > { %v2878_v40 = vpop.eup %2877 }
 0x490   : > { %v2880_v47 = vpop.eup %2879  ;;  %v2106_v6 = vmin.f32 %v2878_v40, 1.0 }
 0x491   : > { %v2882_v48 = vpop.eup %2881  ;;  %v2108_v51 = vmin.f32 %v2880_v47, 1.0 }
 0x492   : > { %v2884_v49 = vpop.eup %2883  ;;  %v2107_v50 = vmin.f32 %v2882_v48, 1.0 }
 0x493   : > { %v2109_v52 = vmin.f32 %v2884_v49, 1.0 }
 0x494   : > { %v2886_v53 = vpop.eup %2885  ;;  %v2533_v54 = vpack.c.bf16 %v2107_v50, %v2106_v6 }
 0x495   : > { %v2534_v55 = vpack.c.bf16 %v2109_v52, %v2108_v51  ;;  %v2114_v58 = vmin.f32 %v2886_v53, 1.0 }
 0x496   : > { %v2888_v56 = vpop.eup %2887  ;;  %2168 = vst [vmem:[%s3428_s26 + $0x10] sm:$0xff] %v2533_v54 }
 0x497   : > { %v2890_v57 = vpop.eup %2889  ;;  %2169 = vst [vmem:[%s3428_s26 + $0x18] sm:$0xff] %v2534_v55  ;;  %v2115_v59 = vmin.f32 %v2888_v56, 1.0 }
 0x498   : > { %v2892_v43 = vpop.eup %2891  ;;  %v2116_v61 = vmin.f32 %v2890_v57, 1.0 }
 0x499   : > { %v2537_v60 = vpack.c.bf16 %v2115_v59, %v2114_v58  ;;  %v2117_v62 = vmin.f32 %v2892_v43, 1.0 }
 0x49b   : > { %2172 = vst [vmem:[%s3428_s26 + $0x30] sm:$0xff] %v2537_v60  ;;  %v2538_v63 = vpack.c.bf16 %v2117_v62, %v2116_v61 }
 0x49d   : > { %2173 = vst [vmem:[%s3428_s26 + $0x38] sm:$0xff] %v2538_v63 }
 0x49e   : > { %3012 = shalt.err (!%p3009_p5)
}
 0x49f   : > { %s3013_s15 = scalar_lea.hbm %s3442_s16, 1024  ;;  %s3017_s26 = scalar_lea.hbm %s3499_s10, 2048 }
 0x4a0   : > { %p3014_p0 = scmp.ne.s32.totalorder %s3442_s16, %s3013_s15  ;;  %p3018_p7 = scmp.lt.s32.totalorder %s3442_s16, %s3499_s10 }
 0x4a1   : > { %p3019_p11 = scmp.lt.s32.totalorder %s3017_s26, %s3013_s15 }
 0x4a2   : > { %p3015_p4 = pnand %p3014_p0, %p3530_p1 }
 0x4a3   : > { %p3020_p10 = por %p3019_p11, %p3018_p7 }
 0x4a4   : > { %p3016_p8 = pneg %p3015_p4 }
 0x4a6   : > { %p3021_p2 = pnand %p3020_p10, %p3016_p8 }
 0x4a8   : > { %3024 = shalt.err (!%p3021_p2)
}
 0x4a9   : > { %s3090_s22 = smov 512  }
 0x4aa   : > { %2677 = dma.vmem_to_hbm [thread:$0]  (%p3530_p1), %s3444_s1, 1024, %s3442_s16, %s2175_s30, %s3090_s22, %s3090_s22, %s3084_s27  }
 0x4ab PF: > { %s2225_s21 = sand.u32 1, %s3059_s17   ;;  %p3531_p6 = scmp.ne.s32.totalorder %s3514_s24, 0 }
 0x4ac   : > { %p3532_p12 = scmp.ge.s32.totalorder %s3071_s20, 2  ;;  %s2226_s29 = scalar_lea.sflag [#allocation4], %s2225_s21 }
 0x4ae   : > { %p2693_p3 = pnand %p3532_p12, %p3531_p6 }
 0x4b0   : > { %p2694_p9 = pneg %p2693_p3 }
 0x4b2   : > { %3050 = dma.done.wait (%p2694_p9), %s2226_s29, 1024  }
 0x4b3   : > { %3052 = vsyncadd (%p2694_p9), %s2226_s29, 4294966272  ;;  %s2235_s25 = scalar_lea.sflag [#allocation10], %s2225_s21 }
 0x4b4   : > { %3054 = dma.done.wait (%p2694_p9), %s2235_s25, 256  }
 0x4b5   : > { %3056 = vsyncadd (%p2694_p9), %s2235_s25, 4294967040  ;;  %s3533_s20 = sld [smem:[#allocation16_spill]]  ;;  %s3536_s17 = smov %s3063_s18 }
 0x4b6   : > { %s3534_s28 = sld [smem:[#allocation15_spill]] }
 0x4b7   : > { %s3535_s19 = sld [smem:[#allocation17_spill]] }
 0x4bb   : > { %p29_p1 = scmp.ge.s32.totalorder %s3533_s20, 4  }
 0x4bc   : > { %s3537_s18 = smov %s3534_s28 }
 0x4bd   :  { %31 = sbr.rel (!%p29_p1) target bundleno = 11 (0xb), region = 133 }
 0x4c2   :  { %2240 = vsyncpa [#allocation3], 1 }
 0x4c3   :  { %2242 = vsyncpa [#allocation3 + $0x1], 1 }
 0x4c4   :  { %2243 = vsyncpa [#allocation6], 1 }
 0x4c5   :  { %2244 = vsyncpa [#allocation4], 1 }
 0x4c6   :  { %2246 = vsyncpa [#allocation4 + $0x1], 1 }
 0x4c7   :  { %2247 = vsyncpa [#allocation10], 1 }
 0x4c8   :  { %2249 = vsyncpa [#allocation10 + $0x1], 1 }

</bundles_post_ra>
